<compile_context>
chip_gen: v5e
topology: v5e:2x2
jax: 0.10.0
libtpu: 0.0.40
codegen_flags: <defaults>
</compile_context>

<pallas_src>
import functools

import jax
import jax.numpy as jnp
from jax import lax
from jax.experimental import pallas as pl
from jax.experimental.pallas import tpu as pltpu


# ----------------------------------------------------------------------------
# Fused kernel (one batch element per grid step):
#   hidden = relu(W1f @ patches1 + b1)                      (hidden, P1)
#   out    = b2 + sum_k W2[k] @ (hidden @ Sel[k])           (z, Q)      [NCHW-flattened]
# ----------------------------------------------------------------------------
def _encoder_kernel(p1_ref, w1_ref, b1_ref, sel_ref, w2_ref, b2_ref, out_ref,
                    *, n_taps: int):
    a = p1_ref[0]                                              # (K1, P1)
    h = jnp.dot(w1_ref[...], a, preferred_element_type=jnp.float32)
    h = jnp.maximum(h + b1_ref[...], 0.0)                      # (C1, P1) conv1 + ReLU

    z_ch, q_out = out_ref.shape[1], out_ref.shape[2]
    acc = jnp.broadcast_to(b2_ref[...], (z_ch, q_out))         # conv2 bias baked into init
    for k in range(n_taps):                                    # static, fully unrolled
        # gather-as-matmul: sel[k] is a constant 0/1 (P1, Q) matrix selecting the
        # stride-2 conv2 patch columns for kernel tap k.
        g = jnp.dot(h, sel_ref[k], preferred_element_type=jnp.float32)          # (C1, Q)
        acc = acc + jnp.dot(w2_ref[k], g, preferred_element_type=jnp.float32)   # (Z,  Q)
    out_ref[0] = acc.astype(out_ref.dtype)


# ----------------------------------------------------------------------------
# Feature-order probe: makes the weight flattening independent of the exact
# channel ordering conv_general_dilated_patches emits (constant-folded under jit).
# ----------------------------------------------------------------------------
def _patches_feature_perm(cin, kh, kw):
    probe = jnp.arange(cin * kh * kw, dtype=jnp.float32).reshape(1, cin, kh, kw)
    p = lax.conv_general_dilated_patches(
        probe, (kh, kw), (1, 1), "VALID",
        dimension_numbers=("NCHW", "OIHW", "NCHW"))
    return p.reshape(cin * kh * kw).astype(jnp.int32)


# ----------------------------------------------------------------------------
# Forward pass:  x (N, 3, H, W) NCHW  ->  q_mean (N, z, OH2, OW2) NCHW
# ----------------------------------------------------------------------------
@jax.jit
def encoder_forward(params, x):
    k, stride = 5, 2
    w1, b1, w2, b2 = params["w1"], params["b1"], params["w2"], params["b2"]
    n, c_in, h_in, w_in = x.shape
    hid = w1.shape[0]
    z_ch = w2.shape[0]
    oh1 = (h_in - k) // stride + 1
    ow1 = (w_in - k) // stride + 1
    oh2 = (oh1 - k) // stride + 1
    ow2 = (ow1 - k) // stride + 1
    p1_dim = oh1 * ow1
    q = oh2 * ow2
    n_taps = k * k
    k1 = c_in * k * k

    # --- conv1 im2col: one fused XLA gather -> (N, Cin*k*k, OH1*OW1) ---
    patches = lax.conv_general_dilated_patches(
        x, (k, k), (stride, stride), "VALID",
        dimension_numbers=("NCHW", "OIHW", "NCHW"))            # (N, K1, OH1, OW1)
    patches = patches.reshape(n, k1, p1_dim)                   # free reshape

    # --- weight-side prep (tiny) ---
    perm = _patches_feature_perm(c_in, k, k)
    w1f = w1.reshape(hid, k1)[:, perm]                         # (hid, K1), matches patch order
    b1c = b1.reshape(hid, 1)
    w2k = jnp.transpose(w2, (2, 3, 0, 1)).reshape(n_taps, z_ch, hid)  # [k] = W2[:, :, kh, kw]
    b2c = b2.reshape(z_ch, 1)

    # --- constant selection tensor: sel[k, p, q] = 1 iff p == (2*oh2+kh)*OW1 + 2*ow2+kw ---
    khr = jnp.arange(k)
    kwr = jnp.arange(k)
    ohr = jnp.arange(oh2)
    owr = jnp.arange(ow2)
    idx = ((stride * ohr[None, None, :, None] + khr[:, None, None, None]) * ow1
           + (stride * owr[None, None, None, :] + kwr[None, :, None, None]))
    idx = idx.reshape(n_taps, q)
    sel = (jnp.arange(p1_dim)[None, :, None] == idx[:, None, :]).astype(jnp.float32)

    flops = n * (2 * hid * k1 * p1_dim
                 + n_taps * (2 * hid * p1_dim * q + 2 * z_ch * hid * q))
    bytes_accessed = 4 * (n * k1 * p1_dim + sel.size + w1f.size + w2k.size
                          + b1c.size + b2c.size + n * z_ch * q)

    out = pl.pallas_call(
        functools.partial(_encoder_kernel, n_taps=n_taps),
        out_shape=jax.ShapeDtypeStruct((n, z_ch, q), jnp.float32),
        grid=(n,),
        in_specs=[
            pl.BlockSpec((1, k1, p1_dim), lambda i: (i, 0, 0)),
            pl.BlockSpec((hid, k1), lambda i: (0, 0)),
            pl.BlockSpec((hid, 1), lambda i: (0, 0)),
            pl.BlockSpec((n_taps, p1_dim, q), lambda i: (0, 0, 0)),
            pl.BlockSpec((n_taps, z_ch, hid), lambda i: (0, 0, 0)),
            pl.BlockSpec((z_ch, 1), lambda i: (0, 0)),
        ],
        out_specs=pl.BlockSpec((1, z_ch, q), lambda i: (i, 0, 0)),
        compiler_params=pltpu.CompilerParams(
            dimension_semantics=("parallel",)),
        cost_estimate=pl.CostEstimate(flops=flops, transcendentals=0,
                                      bytes_accessed=bytes_accessed),
    )(patches, w1f, b1c, sel, w2k, b2c)

    return out.reshape(n, z_ch, oh2, ow2)                      # NCHW, free reshape


# ----------------------------------------------------------------------------
# Parameter init (deterministic, mimics xavier_uniform + PyTorch bias init)
# ----------------------------------------------------------------------------
def init_params(key, hidden_channels=4, z_channels=4):
    k = 5
    k1, k2, k3, k4 = jax.random.split(key, 4)

    def xavier(key, cout, cin, kk):
        fan_in = cin * kk * kk
        fan_out = cout * kk * kk
        bound = (6.0 / (fan_in + fan_out)) ** 0.5
        return jax.random.uniform(key, (cout, cin, kk, kk),
                                  minval=-bound, maxval=bound, dtype=jnp.float32)

    def bias(key, cout, cin, kk):
        bound = 1.0 / (cin * kk * kk) ** 0.5
        return jax.random.uniform(key, (cout,), minval=-bound, maxval=bound,
                                  dtype=jnp.float32)

    w1 = xavier(k1, hidden_channels, 3, k)
    b1 = bias(k2, hidden_channels, 3, k)
    w2 = xavier(k3, z_channels, hidden_channels, k)
    b2 = bias(k4, z_channels, hidden_channels, k)
    return {"w1": w1, "b1": b1, "w2": w2, "b2": b2}


# ----------------------------------------------------------------------------
# Pure-JAX reference (lax.conv) for the correctness check.
# ----------------------------------------------------------------------------
def reference_forward(params, x):
    dn = jax.lax.conv_dimension_numbers(x.shape, params["w1"].shape,
                                        ("NCHW", "OIHW", "NCHW"))
    h = jax.lax.conv_general_dilated(x, params["w1"], (2, 2), "VALID",
                                     dimension_numbers=dn)
    h = jax.nn.relu(h + params["b1"][None, :, None, None])
    dn2 = jax.lax.conv_dimension_numbers(h.shape, params["w2"].shape,
                                         ("NCHW", "OIHW", "NCHW"))
    o = jax.lax.conv_general_dilated(h, params["w2"], (2, 2), "VALID",
                                     dimension_numbers=dn2)
    return o + params["b2"][None, :, None, None]


if __name__ == "__main__":
    key = jax.random.PRNGKey(0)
    pkey, xkey = jax.random.split(key)

    params = init_params(pkey, hidden_channels=4, z_channels=4)

    # 25x25 input -> conv1 (k5,s2) -> 11x11 -> conv2 (k5,s2) -> 4x4,
    # matching the module's z_shape = [4, 4, 4].
    x = jax.random.normal(xkey, (2, 3, 25, 25), dtype=jnp.float32)

    q_mean = jax.block_until_ready(encoder_forward(params, x))
    ref = jax.block_until_ready(reference_forward(params, x))

    assert q_mean.shape == (2, 4, 4, 4), q_mean.shape
    max_err = float(jnp.max(jnp.abs(q_mean - ref)))
    assert jnp.allclose(q_mean, ref, atol=1e-4, rtol=1e-4), max_err

    print("KERNEL_OK")
</pallas_src>

<mosaic_0001>
module attributes {stable_mosaic.version = 11 : i64} {
  func.func @_encoder_kernel(%arg0: i32, %arg1: memref<1x75x121xf32, #tpu.memory_space<vmem>>, %arg2: memref<4x75xf32, #tpu.memory_space<vmem>>, %arg3: memref<4x1xf32, #tpu.memory_space<vmem>>, %arg4: memref<25x121x16xf32, #tpu.memory_space<vmem>>, %arg5: memref<25x4x4xf32, #tpu.memory_space<vmem>>, %arg6: memref<4x1xf32, #tpu.memory_space<vmem>>, %arg7: memref<1x4x16xf32, #tpu.memory_space<vmem>>) attributes {dimension_semantics = [#tpu.dimension_semantics<parallel>], iteration_bounds = array<i64: 2>, scalar_prefetch = 0 : i64, scratch_operands = 0 : i64, tpu.core_type = #tpu.core_type<tc>, window_params = [{transform_indices = @transform_0, window_bounds = array<i64: 1, 75, 121>}, {pipeline_mode = #tpu.pipeline_mode<synchronous>, transform_indices = @transform_1, window_bounds = array<i64: 4, 75>}, {pipeline_mode = #tpu.pipeline_mode<synchronous>, transform_indices = @transform_2, window_bounds = array<i64: 4, 1>}, {pipeline_mode = #tpu.pipeline_mode<synchronous>, transform_indices = @transform_3, window_bounds = array<i64: 25, 121, 16>}, {pipeline_mode = #tpu.pipeline_mode<synchronous>, transform_indices = @transform_4, window_bounds = array<i64: 25, 4, 4>}, {pipeline_mode = #tpu.pipeline_mode<synchronous>, transform_indices = @transform_5, window_bounds = array<i64: 4, 1>}, {transform_indices = @transform_6, window_bounds = array<i64: 1, 4, 16>}]} {
    %c0 = arith.constant 0 : index
    %c0_0 = arith.constant 0 : index
    %c0_1 = arith.constant 0 : index
    %0 = vector.load %arg1[%c0, %c0_0, %c0_1] : memref<1x75x121xf32, #tpu.memory_space<vmem>>, vector<1x75x121xf32>
    %1 = vector.shape_cast %0 : vector<1x75x121xf32> to vector<75x121xf32>
    %c0_2 = arith.constant 0 : index
    %c0_3 = arith.constant 0 : index
    %2 = vector.load %arg2[%c0_2, %c0_3] : memref<4x75xf32, #tpu.memory_space<vmem>>, vector<4x75xf32>
    %cst = arith.constant dense<0.000000e+00> : vector<4x121xf32>
    %3 = tpu.matmul %2, %1, %cst {dimension_numbers = #tpu.dot_dimension_numbers<[1], [0], [0], [1], [0, 0, 1, 1], [], []>} : vector<4x75xf32>, vector<75x121xf32>, vector<4x121xf32> -> vector<4x121xf32>
    %c0_4 = arith.constant 0 : index
    %c0_5 = arith.constant 0 : index
    %4 = vector.load %arg3[%c0_4, %c0_5] : memref<4x1xf32, #tpu.memory_space<vmem>>, vector<4x1xf32>
    %5 = vector.broadcast %4 : vector<4x1xf32> to vector<4x121xf32>
    %6 = arith.addf %3, %5 : vector<4x121xf32>
    %cst_6 = arith.constant 0.000000e+00 : f32
    %7 = vector.broadcast %cst_6 : f32 to vector<4x121xf32>
    %8 = arith.maximumf %6, %7 : vector<4x121xf32>
    %c0_7 = arith.constant 0 : index
    %c0_8 = arith.constant 0 : index
    %9 = vector.load %arg6[%c0_7, %c0_8] : memref<4x1xf32, #tpu.memory_space<vmem>>, vector<4x1xf32>
    %10 = vector.shape_cast %9 : vector<4x1xf32> to vector<4x1xf32>
    %11 = vector.broadcast %10 : vector<4x1xf32> to vector<4x16xf32>
    %c0_9 = arith.constant 0 : index
    %c0_10 = arith.constant 0 : index
    %c0_11 = arith.constant 0 : index
    %12 = vector.load %arg4[%c0_9, %c0_10, %c0_11] : memref<25x121x16xf32, #tpu.memory_space<vmem>>, vector<1x121x16xf32>
    %13 = vector.shape_cast %12 : vector<1x121x16xf32> to vector<121x16xf32>
    %cst_12 = arith.constant dense<0.000000e+00> : vector<4x16xf32>
    %14 = tpu.matmul %8, %13, %cst_12 {dimension_numbers = #tpu.dot_dimension_numbers<[1], [0], [0], [1], [0, 0, 1, 1], [], []>} : vector<4x121xf32>, vector<121x16xf32>, vector<4x16xf32> -> vector<4x16xf32>
    %c0_13 = arith.constant 0 : index
    %c0_14 = arith.constant 0 : index
    %c0_15 = arith.constant 0 : index
    %15 = vector.load %arg5[%c0_13, %c0_14, %c0_15] : memref<25x4x4xf32, #tpu.memory_space<vmem>>, vector<1x4x4xf32>
    %16 = vector.shape_cast %15 : vector<1x4x4xf32> to vector<4x4xf32>
    %cst_16 = arith.constant dense<0.000000e+00> : vector<4x16xf32>
    %17 = tpu.matmul %16, %14, %cst_16 {dimension_numbers = #tpu.dot_dimension_numbers<[1], [0], [0], [1], [0, 0, 1, 1], [], []>} : vector<4x4xf32>, vector<4x16xf32>, vector<4x16xf32> -> vector<4x16xf32>
    %18 = arith.addf %11, %17 : vector<4x16xf32>
    %c1 = arith.constant 1 : index
    %c0_17 = arith.constant 0 : index
    %c0_18 = arith.constant 0 : index
    %19 = vector.load %arg4[%c1, %c0_17, %c0_18] : memref<25x121x16xf32, #tpu.memory_space<vmem>>, vector<1x121x16xf32>
    %20 = vector.shape_cast %19 : vector<1x121x16xf32> to vector<121x16xf32>
    %cst_19 = arith.constant dense<0.000000e+00> : vector<4x16xf32>
    %21 = tpu.matmul %8, %20, %cst_19 {dimension_numbers = #tpu.dot_dimension_numbers<[1], [0], [0], [1], [0, 0, 1, 1], [], []>} : vector<4x121xf32>, vector<121x16xf32>, vector<4x16xf32> -> vector<4x16xf32>
    %c1_20 = arith.constant 1 : index
    %c0_21 = arith.constant 0 : index
    %c0_22 = arith.constant 0 : index
    %22 = vector.load %arg5[%c1_20, %c0_21, %c0_22] : memref<25x4x4xf32, #tpu.memory_space<vmem>>, vector<1x4x4xf32>
    %23 = vector.shape_cast %22 : vector<1x4x4xf32> to vector<4x4xf32>
    %cst_23 = arith.constant dense<0.000000e+00> : vector<4x16xf32>
    %24 = tpu.matmul %23, %21, %cst_23 {dimension_numbers = #tpu.dot_dimension_numbers<[1], [0], [0], [1], [0, 0, 1, 1], [], []>} : vector<4x4xf32>, vector<4x16xf32>, vector<4x16xf32> -> vector<4x16xf32>
    %25 = arith.addf %18, %24 : vector<4x16xf32>
    %c2 = arith.constant 2 : index
    %c0_24 = arith.constant 0 : index
    %c0_25 = arith.constant 0 : index
    %26 = vector.load %arg4[%c2, %c0_24, %c0_25] : memref<25x121x16xf32, #tpu.memory_space<vmem>>, vector<1x121x16xf32>
    %27 = vector.shape_cast %26 : vector<1x121x16xf32> to vector<121x16xf32>
    %cst_26 = arith.constant dense<0.000000e+00> : vector<4x16xf32>
    %28 = tpu.matmul %8, %27, %cst_26 {dimension_numbers = #tpu.dot_dimension_numbers<[1], [0], [0], [1], [0, 0, 1, 1], [], []>} : vector<4x121xf32>, vector<121x16xf32>, vector<4x16xf32> -> vector<4x16xf32>
    %c2_27 = arith.constant 2 : index
    %c0_28 = arith.constant 0 : index
    %c0_29 = arith.constant 0 : index
    %29 = vector.load %arg5[%c2_27, %c0_28, %c0_29] : memref<25x4x4xf32, #tpu.memory_space<vmem>>, vector<1x4x4xf32>
    %30 = vector.shape_cast %29 : vector<1x4x4xf32> to vector<4x4xf32>
    %cst_30 = arith.constant dense<0.000000e+00> : vector<4x16xf32>
    %31 = tpu.matmul %30, %28, %cst_30 {dimension_numbers = #tpu.dot_dimension_numbers<[1], [0], [0], [1], [0, 0, 1, 1], [], []>} : vector<4x4xf32>, vector<4x16xf32>, vector<4x16xf32> -> vector<4x16xf32>
    %32 = arith.addf %25, %31 : vector<4x16xf32>
    %c3 = arith.constant 3 : index
    %c0_31 = arith.constant 0 : index
    %c0_32 = arith.constant 0 : index
    %33 = vector.load %arg4[%c3, %c0_31, %c0_32] : memref<25x121x16xf32, #tpu.memory_space<vmem>>, vector<1x121x16xf32>
    %34 = vector.shape_cast %33 : vector<1x121x16xf32> to vector<121x16xf32>
    %cst_33 = arith.constant dense<0.000000e+00> : vector<4x16xf32>
    %35 = tpu.matmul %8, %34, %cst_33 {dimension_numbers = #tpu.dot_dimension_numbers<[1], [0], [0], [1], [0, 0, 1, 1], [], []>} : vector<4x121xf32>, vector<121x16xf32>, vector<4x16xf32> -> vector<4x16xf32>
    %c3_34 = arith.constant 3 : index
    %c0_35 = arith.constant 0 : index
    %c0_36 = arith.constant 0 : index
    %36 = vector.load %arg5[%c3_34, %c0_35, %c0_36] : memref<25x4x4xf32, #tpu.memory_space<vmem>>, vector<1x4x4xf32>
    %37 = vector.shape_cast %36 : vector<1x4x4xf32> to vector<4x4xf32>
    %cst_37 = arith.constant dense<0.000000e+00> : vector<4x16xf32>
    %38 = tpu.matmul %37, %35, %cst_37 {dimension_numbers = #tpu.dot_dimension_numbers<[1], [0], [0], [1], [0, 0, 1, 1], [], []>} : vector<4x4xf32>, vector<4x16xf32>, vector<4x16xf32> -> vector<4x16xf32>
    %39 = arith.addf %32, %38 : vector<4x16xf32>
    %c4 = arith.constant 4 : index
    %c0_38 = arith.constant 0 : index
    %c0_39 = arith.constant 0 : index
    %40 = vector.load %arg4[%c4, %c0_38, %c0_39] : memref<25x121x16xf32, #tpu.memory_space<vmem>>, vector<1x121x16xf32>
    %41 = vector.shape_cast %40 : vector<1x121x16xf32> to vector<121x16xf32>
    %cst_40 = arith.constant dense<0.000000e+00> : vector<4x16xf32>
    %42 = tpu.matmul %8, %41, %cst_40 {dimension_numbers = #tpu.dot_dimension_numbers<[1], [0], [0], [1], [0, 0, 1, 1], [], []>} : vector<4x121xf32>, vector<121x16xf32>, vector<4x16xf32> -> vector<4x16xf32>
    %c4_41 = arith.constant 4 : index
    %c0_42 = arith.constant 0 : index
    %c0_43 = arith.constant 0 : index
    %43 = vector.load %arg5[%c4_41, %c0_42, %c0_43] : memref<25x4x4xf32, #tpu.memory_space<vmem>>, vector<1x4x4xf32>
    %44 = vector.shape_cast %43 : vector<1x4x4xf32> to vector<4x4xf32>
    %cst_44 = arith.constant dense<0.000000e+00> : vector<4x16xf32>
    %45 = tpu.matmul %44, %42, %cst_44 {dimension_numbers = #tpu.dot_dimension_numbers<[1], [0], [0], [1], [0, 0, 1, 1], [], []>} : vector<4x4xf32>, vector<4x16xf32>, vector<4x16xf32> -> vector<4x16xf32>
    %46 = arith.addf %39, %45 : vector<4x16xf32>
    %c5 = arith.constant 5 : index
    %c0_45 = arith.constant 0 : index
    %c0_46 = arith.constant 0 : index
    %47 = vector.load %arg4[%c5, %c0_45, %c0_46] : memref<25x121x16xf32, #tpu.memory_space<vmem>>, vector<1x121x16xf32>
    %48 = vector.shape_cast %47 : vector<1x121x16xf32> to vector<121x16xf32>
    %cst_47 = arith.constant dense<0.000000e+00> : vector<4x16xf32>
    %49 = tpu.matmul %8, %48, %cst_47 {dimension_numbers = #tpu.dot_dimension_numbers<[1], [0], [0], [1], [0, 0, 1, 1], [], []>} : vector<4x121xf32>, vector<121x16xf32>, vector<4x16xf32> -> vector<4x16xf32>
    %c5_48 = arith.constant 5 : index
    %c0_49 = arith.constant 0 : index
    %c0_50 = arith.constant 0 : index
    %50 = vector.load %arg5[%c5_48, %c0_49, %c0_50] : memref<25x4x4xf32, #tpu.memory_space<vmem>>, vector<1x4x4xf32>
    %51 = vector.shape_cast %50 : vector<1x4x4xf32> to vector<4x4xf32>
    %cst_51 = arith.constant dense<0.000000e+00> : vector<4x16xf32>
    %52 = tpu.matmul %51, %49, %cst_51 {dimension_numbers = #tpu.dot_dimension_numbers<[1], [0], [0], [1], [0, 0, 1, 1], [], []>} : vector<4x4xf32>, vector<4x16xf32>, vector<4x16xf32> -> vector<4x16xf32>
    %53 = arith.addf %46, %52 : vector<4x16xf32>
    %c6 = arith.constant 6 : index
    %c0_52 = arith.constant 0 : index
    %c0_53 = arith.constant 0 : index
    %54 = vector.load %arg4[%c6, %c0_52, %c0_53] : memref<25x121x16xf32, #tpu.memory_space<vmem>>, vector<1x121x16xf32>
    %55 = vector.shape_cast %54 : vector<1x121x16xf32> to vector<121x16xf32>
    %cst_54 = arith.constant dense<0.000000e+00> : vector<4x16xf32>
    %56 = tpu.matmul %8, %55, %cst_54 {dimension_numbers = #tpu.dot_dimension_numbers<[1], [0], [0], [1], [0, 0, 1, 1], [], []>} : vector<4x121xf32>, vector<121x16xf32>, vector<4x16xf32> -> vector<4x16xf32>
    %c6_55 = arith.constant 6 : index
    %c0_56 = arith.constant 0 : index
    %c0_57 = arith.constant 0 : index
    %57 = vector.load %arg5[%c6_55, %c0_56, %c0_57] : memref<25x4x4xf32, #tpu.memory_space<vmem>>, vector<1x4x4xf32>
    %58 = vector.shape_cast %57 : vector<1x4x4xf32> to vector<4x4xf32>
    %cst_58 = arith.constant dense<0.000000e+00> : vector<4x16xf32>
    %59 = tpu.matmul %58, %56, %cst_58 {dimension_numbers = #tpu.dot_dimension_numbers<[1], [0], [0], [1], [0, 0, 1, 1], [], []>} : vector<4x4xf32>, vector<4x16xf32>, vector<4x16xf32> -> vector<4x16xf32>
    %60 = arith.addf %53, %59 : vector<4x16xf32>
    %c7 = arith.constant 7 : index
    %c0_59 = arith.constant 0 : index
    %c0_60 = arith.constant 0 : index
    %61 = vector.load %arg4[%c7, %c0_59, %c0_60] : memref<25x121x16xf32, #tpu.memory_space<vmem>>, vector<1x121x16xf32>
    %62 = vector.shape_cast %61 : vector<1x121x16xf32> to vector<121x16xf32>
    %cst_61 = arith.constant dense<0.000000e+00> : vector<4x16xf32>
    %63 = tpu.matmul %8, %62, %cst_61 {dimension_numbers = #tpu.dot_dimension_numbers<[1], [0], [0], [1], [0, 0, 1, 1], [], []>} : vector<4x121xf32>, vector<121x16xf32>, vector<4x16xf32> -> vector<4x16xf32>
    %c7_62 = arith.constant 7 : index
    %c0_63 = arith.constant 0 : index
    %c0_64 = arith.constant 0 : index
    %64 = vector.load %arg5[%c7_62, %c0_63, %c0_64] : memref<25x4x4xf32, #tpu.memory_space<vmem>>, vector<1x4x4xf32>
    %65 = vector.shape_cast %64 : vector<1x4x4xf32> to vector<4x4xf32>
    %cst_65 = arith.constant dense<0.000000e+00> : vector<4x16xf32>
    %66 = tpu.matmul %65, %63, %cst_65 {dimension_numbers = #tpu.dot_dimension_numbers<[1], [0], [0], [1], [0, 0, 1, 1], [], []>} : vector<4x4xf32>, vector<4x16xf32>, vector<4x16xf32> -> vector<4x16xf32>
    %67 = arith.addf %60, %66 : vector<4x16xf32>
    %c8 = arith.constant 8 : index
    %c0_66 = arith.constant 0 : index
    %c0_67 = arith.constant 0 : index
    %68 = vector.load %arg4[%c8, %c0_66, %c0_67] : memref<25x121x16xf32, #tpu.memory_space<vmem>>, vector<1x121x16xf32>
    %69 = vector.shape_cast %68 : vector<1x121x16xf32> to vector<121x16xf32>
    %cst_68 = arith.constant dense<0.000000e+00> : vector<4x16xf32>
    %70 = tpu.matmul %8, %69, %cst_68 {dimension_numbers = #tpu.dot_dimension_numbers<[1], [0], [0], [1], [0, 0, 1, 1], [], []>} : vector<4x121xf32>, vector<121x16xf32>, vector<4x16xf32> -> vector<4x16xf32>
    %c8_69 = arith.constant 8 : index
    %c0_70 = arith.constant 0 : index
    %c0_71 = arith.constant 0 : index
    %71 = vector.load %arg5[%c8_69, %c0_70, %c0_71] : memref<25x4x4xf32, #tpu.memory_space<vmem>>, vector<1x4x4xf32>
    %72 = vector.shape_cast %71 : vector<1x4x4xf32> to vector<4x4xf32>
    %cst_72 = arith.constant dense<0.000000e+00> : vector<4x16xf32>
    %73 = tpu.matmul %72, %70, %cst_72 {dimension_numbers = #tpu.dot_dimension_numbers<[1], [0], [0], [1], [0, 0, 1, 1], [], []>} : vector<4x4xf32>, vector<4x16xf32>, vector<4x16xf32> -> vector<4x16xf32>
    %74 = arith.addf %67, %73 : vector<4x16xf32>
    %c9 = arith.constant 9 : index
    %c0_73 = arith.constant 0 : index
    %c0_74 = arith.constant 0 : index
    %75 = vector.load %arg4[%c9, %c0_73, %c0_74] : memref<25x121x16xf32, #tpu.memory_space<vmem>>, vector<1x121x16xf32>
    %76 = vector.shape_cast %75 : vector<1x121x16xf32> to vector<121x16xf32>
    %cst_75 = arith.constant dense<0.000000e+00> : vector<4x16xf32>
    %77 = tpu.matmul %8, %76, %cst_75 {dimension_numbers = #tpu.dot_dimension_numbers<[1], [0], [0], [1], [0, 0, 1, 1], [], []>} : vector<4x121xf32>, vector<121x16xf32>, vector<4x16xf32> -> vector<4x16xf32>
    %c9_76 = arith.constant 9 : index
    %c0_77 = arith.constant 0 : index
    %c0_78 = arith.constant 0 : index
    %78 = vector.load %arg5[%c9_76, %c0_77, %c0_78] : memref<25x4x4xf32, #tpu.memory_space<vmem>>, vector<1x4x4xf32>
    %79 = vector.shape_cast %78 : vector<1x4x4xf32> to vector<4x4xf32>
    %cst_79 = arith.constant dense<0.000000e+00> : vector<4x16xf32>
    %80 = tpu.matmul %79, %77, %cst_79 {dimension_numbers = #tpu.dot_dimension_numbers<[1], [0], [0], [1], [0, 0, 1, 1], [], []>} : vector<4x4xf32>, vector<4x16xf32>, vector<4x16xf32> -> vector<4x16xf32>
    %81 = arith.addf %74, %80 : vector<4x16xf32>
    %c10 = arith.constant 10 : index
    %c0_80 = arith.constant 0 : index
    %c0_81 = arith.constant 0 : index
    %82 = vector.load %arg4[%c10, %c0_80, %c0_81] : memref<25x121x16xf32, #tpu.memory_space<vmem>>, vector<1x121x16xf32>
    %83 = vector.shape_cast %82 : vector<1x121x16xf32> to vector<121x16xf32>
    %cst_82 = arith.constant dense<0.000000e+00> : vector<4x16xf32>
    %84 = tpu.matmul %8, %83, %cst_82 {dimension_numbers = #tpu.dot_dimension_numbers<[1], [0], [0], [1], [0, 0, 1, 1], [], []>} : vector<4x121xf32>, vector<121x16xf32>, vector<4x16xf32> -> vector<4x16xf32>
    %c10_83 = arith.constant 10 : index
    %c0_84 = arith.constant 0 : index
    %c0_85 = arith.constant 0 : index
    %85 = vector.load %arg5[%c10_83, %c0_84, %c0_85] : memref<25x4x4xf32, #tpu.memory_space<vmem>>, vector<1x4x4xf32>
    %86 = vector.shape_cast %85 : vector<1x4x4xf32> to vector<4x4xf32>
    %cst_86 = arith.constant dense<0.000000e+00> : vector<4x16xf32>
    %87 = tpu.matmul %86, %84, %cst_86 {dimension_numbers = #tpu.dot_dimension_numbers<[1], [0], [0], [1], [0, 0, 1, 1], [], []>} : vector<4x4xf32>, vector<4x16xf32>, vector<4x16xf32> -> vector<4x16xf32>
    %88 = arith.addf %81, %87 : vector<4x16xf32>
    %c11 = arith.constant 11 : index
    %c0_87 = arith.constant 0 : index
    %c0_88 = arith.constant 0 : index
    %89 = vector.load %arg4[%c11, %c0_87, %c0_88] : memref<25x121x16xf32, #tpu.memory_space<vmem>>, vector<1x121x16xf32>
    %90 = vector.shape_cast %89 : vector<1x121x16xf32> to vector<121x16xf32>
    %cst_89 = arith.constant dense<0.000000e+00> : vector<4x16xf32>
    %91 = tpu.matmul %8, %90, %cst_89 {dimension_numbers = #tpu.dot_dimension_numbers<[1], [0], [0], [1], [0, 0, 1, 1], [], []>} : vector<4x121xf32>, vector<121x16xf32>, vector<4x16xf32> -> vector<4x16xf32>
    %c11_90 = arith.constant 11 : index
    %c0_91 = arith.constant 0 : index
    %c0_92 = arith.constant 0 : index
    %92 = vector.load %arg5[%c11_90, %c0_91, %c0_92] : memref<25x4x4xf32, #tpu.memory_space<vmem>>, vector<1x4x4xf32>
    %93 = vector.shape_cast %92 : vector<1x4x4xf32> to vector<4x4xf32>
    %cst_93 = arith.constant dense<0.000000e+00> : vector<4x16xf32>
    %94 = tpu.matmul %93, %91, %cst_93 {dimension_numbers = #tpu.dot_dimension_numbers<[1], [0], [0], [1], [0, 0, 1, 1], [], []>} : vector<4x4xf32>, vector<4x16xf32>, vector<4x16xf32> -> vector<4x16xf32>
    %95 = arith.addf %88, %94 : vector<4x16xf32>
    %c12 = arith.constant 12 : index
    %c0_94 = arith.constant 0 : index
    %c0_95 = arith.constant 0 : index
    %96 = vector.load %arg4[%c12, %c0_94, %c0_95] : memref<25x121x16xf32, #tpu.memory_space<vmem>>, vector<1x121x16xf32>
    %97 = vector.shape_cast %96 : vector<1x121x16xf32> to vector<121x16xf32>
    %cst_96 = arith.constant dense<0.000000e+00> : vector<4x16xf32>
    %98 = tpu.matmul %8, %97, %cst_96 {dimension_numbers = #tpu.dot_dimension_numbers<[1], [0], [0], [1], [0, 0, 1, 1], [], []>} : vector<4x121xf32>, vector<121x16xf32>, vector<4x16xf32> -> vector<4x16xf32>
    %c12_97 = arith.constant 12 : index
    %c0_98 = arith.constant 0 : index
    %c0_99 = arith.constant 0 : index
    %99 = vector.load %arg5[%c12_97, %c0_98, %c0_99] : memref<25x4x4xf32, #tpu.memory_space<vmem>>, vector<1x4x4xf32>
    %100 = vector.shape_cast %99 : vector<1x4x4xf32> to vector<4x4xf32>
    %cst_100 = arith.constant dense<0.000000e+00> : vector<4x16xf32>
    %101 = tpu.matmul %100, %98, %cst_100 {dimension_numbers = #tpu.dot_dimension_numbers<[1], [0], [0], [1], [0, 0, 1, 1], [], []>} : vector<4x4xf32>, vector<4x16xf32>, vector<4x16xf32> -> vector<4x16xf32>
    %102 = arith.addf %95, %101 : vector<4x16xf32>
    %c13 = arith.constant 13 : index
    %c0_101 = arith.constant 0 : index
    %c0_102 = arith.constant 0 : index
    %103 = vector.load %arg4[%c13, %c0_101, %c0_102] : memref<25x121x16xf32, #tpu.memory_space<vmem>>, vector<1x121x16xf32>
    %104 = vector.shape_cast %103 : vector<1x121x16xf32> to vector<121x16xf32>
    %cst_103 = arith.constant dense<0.000000e+00> : vector<4x16xf32>
    %105 = tpu.matmul %8, %104, %cst_103 {dimension_numbers = #tpu.dot_dimension_numbers<[1], [0], [0], [1], [0, 0, 1, 1], [], []>} : vector<4x121xf32>, vector<121x16xf32>, vector<4x16xf32> -> vector<4x16xf32>
    %c13_104 = arith.constant 13 : index
    %c0_105 = arith.constant 0 : index
    %c0_106 = arith.constant 0 : index
    %106 = vector.load %arg5[%c13_104, %c0_105, %c0_106] : memref<25x4x4xf32, #tpu.memory_space<vmem>>, vector<1x4x4xf32>
    %107 = vector.shape_cast %106 : vector<1x4x4xf32> to vector<4x4xf32>
    %cst_107 = arith.constant dense<0.000000e+00> : vector<4x16xf32>
    %108 = tpu.matmul %107, %105, %cst_107 {dimension_numbers = #tpu.dot_dimension_numbers<[1], [0], [0], [1], [0, 0, 1, 1], [], []>} : vector<4x4xf32>, vector<4x16xf32>, vector<4x16xf32> -> vector<4x16xf32>
    %109 = arith.addf %102, %108 : vector<4x16xf32>
    %c14 = arith.constant 14 : index
    %c0_108 = arith.constant 0 : index
    %c0_109 = arith.constant 0 : index
    %110 = vector.load %arg4[%c14, %c0_108, %c0_109] : memref<25x121x16xf32, #tpu.memory_space<vmem>>, vector<1x121x16xf32>
    %111 = vector.shape_cast %110 : vector<1x121x16xf32> to vector<121x16xf32>
    %cst_110 = arith.constant dense<0.000000e+00> : vector<4x16xf32>
    %112 = tpu.matmul %8, %111, %cst_110 {dimension_numbers = #tpu.dot_dimension_numbers<[1], [0], [0], [1], [0, 0, 1, 1], [], []>} : vector<4x121xf32>, vector<121x16xf32>, vector<4x16xf32> -> vector<4x16xf32>
    %c14_111 = arith.constant 14 : index
    %c0_112 = arith.constant 0 : index
    %c0_113 = arith.constant 0 : index
    %113 = vector.load %arg5[%c14_111, %c0_112, %c0_113] : memref<25x4x4xf32, #tpu.memory_space<vmem>>, vector<1x4x4xf32>
    %114 = vector.shape_cast %113 : vector<1x4x4xf32> to vector<4x4xf32>
    %cst_114 = arith.constant dense<0.000000e+00> : vector<4x16xf32>
    %115 = tpu.matmul %114, %112, %cst_114 {dimension_numbers = #tpu.dot_dimension_numbers<[1], [0], [0], [1], [0, 0, 1, 1], [], []>} : vector<4x4xf32>, vector<4x16xf32>, vector<4x16xf32> -> vector<4x16xf32>
    %116 = arith.addf %109, %115 : vector<4x16xf32>
    %c15 = arith.constant 15 : index
    %c0_115 = arith.constant 0 : index
    %c0_116 = arith.constant 0 : index
    %117 = vector.load %arg4[%c15, %c0_115, %c0_116] : memref<25x121x16xf32, #tpu.memory_space<vmem>>, vector<1x121x16xf32>
    %118 = vector.shape_cast %117 : vector<1x121x16xf32> to vector<121x16xf32>
    %cst_117 = arith.constant dense<0.000000e+00> : vector<4x16xf32>
    %119 = tpu.matmul %8, %118, %cst_117 {dimension_numbers = #tpu.dot_dimension_numbers<[1], [0], [0], [1], [0, 0, 1, 1], [], []>} : vector<4x121xf32>, vector<121x16xf32>, vector<4x16xf32> -> vector<4x16xf32>
    %c15_118 = arith.constant 15 : index
    %c0_119 = arith.constant 0 : index
    %c0_120 = arith.constant 0 : index
    %120 = vector.load %arg5[%c15_118, %c0_119, %c0_120] : memref<25x4x4xf32, #tpu.memory_space<vmem>>, vector<1x4x4xf32>
    %121 = vector.shape_cast %120 : vector<1x4x4xf32> to vector<4x4xf32>
    %cst_121 = arith.constant dense<0.000000e+00> : vector<4x16xf32>
    %122 = tpu.matmul %121, %119, %cst_121 {dimension_numbers = #tpu.dot_dimension_numbers<[1], [0], [0], [1], [0, 0, 1, 1], [], []>} : vector<4x4xf32>, vector<4x16xf32>, vector<4x16xf32> -> vector<4x16xf32>
    %123 = arith.addf %116, %122 : vector<4x16xf32>
    %c16 = arith.constant 16 : index
    %c0_122 = arith.constant 0 : index
    %c0_123 = arith.constant 0 : index
    %124 = vector.load %arg4[%c16, %c0_122, %c0_123] : memref<25x121x16xf32, #tpu.memory_space<vmem>>, vector<1x121x16xf32>
    %125 = vector.shape_cast %124 : vector<1x121x16xf32> to vector<121x16xf32>
    %cst_124 = arith.constant dense<0.000000e+00> : vector<4x16xf32>
    %126 = tpu.matmul %8, %125, %cst_124 {dimension_numbers = #tpu.dot_dimension_numbers<[1], [0], [0], [1], [0, 0, 1, 1], [], []>} : vector<4x121xf32>, vector<121x16xf32>, vector<4x16xf32> -> vector<4x16xf32>
    %c16_125 = arith.constant 16 : index
    %c0_126 = arith.constant 0 : index
    %c0_127 = arith.constant 0 : index
    %127 = vector.load %arg5[%c16_125, %c0_126, %c0_127] : memref<25x4x4xf32, #tpu.memory_space<vmem>>, vector<1x4x4xf32>
    %128 = vector.shape_cast %127 : vector<1x4x4xf32> to vector<4x4xf32>
    %cst_128 = arith.constant dense<0.000000e+00> : vector<4x16xf32>
    %129 = tpu.matmul %128, %126, %cst_128 {dimension_numbers = #tpu.dot_dimension_numbers<[1], [0], [0], [1], [0, 0, 1, 1], [], []>} : vector<4x4xf32>, vector<4x16xf32>, vector<4x16xf32> -> vector<4x16xf32>
    %130 = arith.addf %123, %129 : vector<4x16xf32>
    %c17 = arith.constant 17 : index
    %c0_129 = arith.constant 0 : index
    %c0_130 = arith.constant 0 : index
    %131 = vector.load %arg4[%c17, %c0_129, %c0_130] : memref<25x121x16xf32, #tpu.memory_space<vmem>>, vector<1x121x16xf32>
    %132 = vector.shape_cast %131 : vector<1x121x16xf32> to vector<121x16xf32>
    %cst_131 = arith.constant dense<0.000000e+00> : vector<4x16xf32>
    %133 = tpu.matmul %8, %132, %cst_131 {dimension_numbers = #tpu.dot_dimension_numbers<[1], [0], [0], [1], [0, 0, 1, 1], [], []>} : vector<4x121xf32>, vector<121x16xf32>, vector<4x16xf32> -> vector<4x16xf32>
    %c17_132 = arith.constant 17 : index
    %c0_133 = arith.constant 0 : index
    %c0_134 = arith.constant 0 : index
    %134 = vector.load %arg5[%c17_132, %c0_133, %c0_134] : memref<25x4x4xf32, #tpu.memory_space<vmem>>, vector<1x4x4xf32>
    %135 = vector.shape_cast %134 : vector<1x4x4xf32> to vector<4x4xf32>
    %cst_135 = arith.constant dense<0.000000e+00> : vector<4x16xf32>
    %136 = tpu.matmul %135, %133, %cst_135 {dimension_numbers = #tpu.dot_dimension_numbers<[1], [0], [0], [1], [0, 0, 1, 1], [], []>} : vector<4x4xf32>, vector<4x16xf32>, vector<4x16xf32> -> vector<4x16xf32>
    %137 = arith.addf %130, %136 : vector<4x16xf32>
    %c18 = arith.constant 18 : index
    %c0_136 = arith.constant 0 : index
    %c0_137 = arith.constant 0 : index
    %138 = vector.load %arg4[%c18, %c0_136, %c0_137] : memref<25x121x16xf32, #tpu.memory_space<vmem>>, vector<1x121x16xf32>
    %139 = vector.shape_cast %138 : vector<1x121x16xf32> to vector<121x16xf32>
    %cst_138 = arith.constant dense<0.000000e+00> : vector<4x16xf32>
    %140 = tpu.matmul %8, %139, %cst_138 {dimension_numbers = #tpu.dot_dimension_numbers<[1], [0], [0], [1], [0, 0, 1, 1], [], []>} : vector<4x121xf32>, vector<121x16xf32>, vector<4x16xf32> -> vector<4x16xf32>
    %c18_139 = arith.constant 18 : index
    %c0_140 = arith.constant 0 : index
    %c0_141 = arith.constant 0 : index
    %141 = vector.load %arg5[%c18_139, %c0_140, %c0_141] : memref<25x4x4xf32, #tpu.memory_space<vmem>>, vector<1x4x4xf32>
    %142 = vector.shape_cast %141 : vector<1x4x4xf32> to vector<4x4xf32>
    %cst_142 = arith.constant dense<0.000000e+00> : vector<4x16xf32>
    %143 = tpu.matmul %142, %140, %cst_142 {dimension_numbers = #tpu.dot_dimension_numbers<[1], [0], [0], [1], [0, 0, 1, 1], [], []>} : vector<4x4xf32>, vector<4x16xf32>, vector<4x16xf32> -> vector<4x16xf32>
    %144 = arith.addf %137, %143 : vector<4x16xf32>
    %c19 = arith.constant 19 : index
    %c0_143 = arith.constant 0 : index
    %c0_144 = arith.constant 0 : index
    %145 = vector.load %arg4[%c19, %c0_143, %c0_144] : memref<25x121x16xf32, #tpu.memory_space<vmem>>, vector<1x121x16xf32>
    %146 = vector.shape_cast %145 : vector<1x121x16xf32> to vector<121x16xf32>
    %cst_145 = arith.constant dense<0.000000e+00> : vector<4x16xf32>
    %147 = tpu.matmul %8, %146, %cst_145 {dimension_numbers = #tpu.dot_dimension_numbers<[1], [0], [0], [1], [0, 0, 1, 1], [], []>} : vector<4x121xf32>, vector<121x16xf32>, vector<4x16xf32> -> vector<4x16xf32>
    %c19_146 = arith.constant 19 : index
    %c0_147 = arith.constant 0 : index
    %c0_148 = arith.constant 0 : index
    %148 = vector.load %arg5[%c19_146, %c0_147, %c0_148] : memref<25x4x4xf32, #tpu.memory_space<vmem>>, vector<1x4x4xf32>
    %149 = vector.shape_cast %148 : vector<1x4x4xf32> to vector<4x4xf32>
    %cst_149 = arith.constant dense<0.000000e+00> : vector<4x16xf32>
    %150 = tpu.matmul %149, %147, %cst_149 {dimension_numbers = #tpu.dot_dimension_numbers<[1], [0], [0], [1], [0, 0, 1, 1], [], []>} : vector<4x4xf32>, vector<4x16xf32>, vector<4x16xf32> -> vector<4x16xf32>
    %151 = arith.addf %144, %150 : vector<4x16xf32>
    %c20 = arith.constant 20 : index
    %c0_150 = arith.constant 0 : index
    %c0_151 = arith.constant 0 : index
    %152 = vector.load %arg4[%c20, %c0_150, %c0_151] : memref<25x121x16xf32, #tpu.memory_space<vmem>>, vector<1x121x16xf32>
    %153 = vector.shape_cast %152 : vector<1x121x16xf32> to vector<121x16xf32>
    %cst_152 = arith.constant dense<0.000000e+00> : vector<4x16xf32>
    %154 = tpu.matmul %8, %153, %cst_152 {dimension_numbers = #tpu.dot_dimension_numbers<[1], [0], [0], [1], [0, 0, 1, 1], [], []>} : vector<4x121xf32>, vector<121x16xf32>, vector<4x16xf32> -> vector<4x16xf32>
    %c20_153 = arith.constant 20 : index
    %c0_154 = arith.constant 0 : index
    %c0_155 = arith.constant 0 : index
    %155 = vector.load %arg5[%c20_153, %c0_154, %c0_155] : memref<25x4x4xf32, #tpu.memory_space<vmem>>, vector<1x4x4xf32>
    %156 = vector.shape_cast %155 : vector<1x4x4xf32> to vector<4x4xf32>
    %cst_156 = arith.constant dense<0.000000e+00> : vector<4x16xf32>
    %157 = tpu.matmul %156, %154, %cst_156 {dimension_numbers = #tpu.dot_dimension_numbers<[1], [0], [0], [1], [0, 0, 1, 1], [], []>} : vector<4x4xf32>, vector<4x16xf32>, vector<4x16xf32> -> vector<4x16xf32>
    %158 = arith.addf %151, %157 : vector<4x16xf32>
    %c21 = arith.constant 21 : index
    %c0_157 = arith.constant 0 : index
    %c0_158 = arith.constant 0 : index
    %159 = vector.load %arg4[%c21, %c0_157, %c0_158] : memref<25x121x16xf32, #tpu.memory_space<vmem>>, vector<1x121x16xf32>
    %160 = vector.shape_cast %159 : vector<1x121x16xf32> to vector<121x16xf32>
    %cst_159 = arith.constant dense<0.000000e+00> : vector<4x16xf32>
    %161 = tpu.matmul %8, %160, %cst_159 {dimension_numbers = #tpu.dot_dimension_numbers<[1], [0], [0], [1], [0, 0, 1, 1], [], []>} : vector<4x121xf32>, vector<121x16xf32>, vector<4x16xf32> -> vector<4x16xf32>
    %c21_160 = arith.constant 21 : index
    %c0_161 = arith.constant 0 : index
    %c0_162 = arith.constant 0 : index
    %162 = vector.load %arg5[%c21_160, %c0_161, %c0_162] : memref<25x4x4xf32, #tpu.memory_space<vmem>>, vector<1x4x4xf32>
    %163 = vector.shape_cast %162 : vector<1x4x4xf32> to vector<4x4xf32>
    %cst_163 = arith.constant dense<0.000000e+00> : vector<4x16xf32>
    %164 = tpu.matmul %163, %161, %cst_163 {dimension_numbers = #tpu.dot_dimension_numbers<[1], [0], [0], [1], [0, 0, 1, 1], [], []>} : vector<4x4xf32>, vector<4x16xf32>, vector<4x16xf32> -> vector<4x16xf32>
    %165 = arith.addf %158, %164 : vector<4x16xf32>
    %c22 = arith.constant 22 : index
    %c0_164 = arith.constant 0 : index
    %c0_165 = arith.constant 0 : index
    %166 = vector.load %arg4[%c22, %c0_164, %c0_165] : memref<25x121x16xf32, #tpu.memory_space<vmem>>, vector<1x121x16xf32>
    %167 = vector.shape_cast %166 : vector<1x121x16xf32> to vector<121x16xf32>
    %cst_166 = arith.constant dense<0.000000e+00> : vector<4x16xf32>
    %168 = tpu.matmul %8, %167, %cst_166 {dimension_numbers = #tpu.dot_dimension_numbers<[1], [0], [0], [1], [0, 0, 1, 1], [], []>} : vector<4x121xf32>, vector<121x16xf32>, vector<4x16xf32> -> vector<4x16xf32>
    %c22_167 = arith.constant 22 : index
    %c0_168 = arith.constant 0 : index
    %c0_169 = arith.constant 0 : index
    %169 = vector.load %arg5[%c22_167, %c0_168, %c0_169] : memref<25x4x4xf32, #tpu.memory_space<vmem>>, vector<1x4x4xf32>
    %170 = vector.shape_cast %169 : vector<1x4x4xf32> to vector<4x4xf32>
    %cst_170 = arith.constant dense<0.000000e+00> : vector<4x16xf32>
    %171 = tpu.matmul %170, %168, %cst_170 {dimension_numbers = #tpu.dot_dimension_numbers<[1], [0], [0], [1], [0, 0, 1, 1], [], []>} : vector<4x4xf32>, vector<4x16xf32>, vector<4x16xf32> -> vector<4x16xf32>
    %172 = arith.addf %165, %171 : vector<4x16xf32>
    %c23 = arith.constant 23 : index
    %c0_171 = arith.constant 0 : index
    %c0_172 = arith.constant 0 : index
    %173 = vector.load %arg4[%c23, %c0_171, %c0_172] : memref<25x121x16xf32, #tpu.memory_space<vmem>>, vector<1x121x16xf32>
    %174 = vector.shape_cast %173 : vector<1x121x16xf32> to vector<121x16xf32>
    %cst_173 = arith.constant dense<0.000000e+00> : vector<4x16xf32>
    %175 = tpu.matmul %8, %174, %cst_173 {dimension_numbers = #tpu.dot_dimension_numbers<[1], [0], [0], [1], [0, 0, 1, 1], [], []>} : vector<4x121xf32>, vector<121x16xf32>, vector<4x16xf32> -> vector<4x16xf32>
    %c23_174 = arith.constant 23 : index
    %c0_175 = arith.constant 0 : index
    %c0_176 = arith.constant 0 : index
    %176 = vector.load %arg5[%c23_174, %c0_175, %c0_176] : memref<25x4x4xf32, #tpu.memory_space<vmem>>, vector<1x4x4xf32>
    %177 = vector.shape_cast %176 : vector<1x4x4xf32> to vector<4x4xf32>
    %cst_177 = arith.constant dense<0.000000e+00> : vector<4x16xf32>
    %178 = tpu.matmul %177, %175, %cst_177 {dimension_numbers = #tpu.dot_dimension_numbers<[1], [0], [0], [1], [0, 0, 1, 1], [], []>} : vector<4x4xf32>, vector<4x16xf32>, vector<4x16xf32> -> vector<4x16xf32>
    %179 = arith.addf %172, %178 : vector<4x16xf32>
    %c24 = arith.constant 24 : index
    %c0_178 = arith.constant 0 : index
    %c0_179 = arith.constant 0 : index
    %180 = vector.load %arg4[%c24, %c0_178, %c0_179] : memref<25x121x16xf32, #tpu.memory_space<vmem>>, vector<1x121x16xf32>
    %181 = vector.shape_cast %180 : vector<1x121x16xf32> to vector<121x16xf32>
    %cst_180 = arith.constant dense<0.000000e+00> : vector<4x16xf32>
    %182 = tpu.matmul %8, %181, %cst_180 {dimension_numbers = #tpu.dot_dimension_numbers<[1], [0], [0], [1], [0, 0, 1, 1], [], []>} : vector<4x121xf32>, vector<121x16xf32>, vector<4x16xf32> -> vector<4x16xf32>
    %c24_181 = arith.constant 24 : index
    %c0_182 = arith.constant 0 : index
    %c0_183 = arith.constant 0 : index
    %183 = vector.load %arg5[%c24_181, %c0_182, %c0_183] : memref<25x4x4xf32, #tpu.memory_space<vmem>>, vector<1x4x4xf32>
    %184 = vector.shape_cast %183 : vector<1x4x4xf32> to vector<4x4xf32>
    %cst_184 = arith.constant dense<0.000000e+00> : vector<4x16xf32>
    %185 = tpu.matmul %184, %182, %cst_184 {dimension_numbers = #tpu.dot_dimension_numbers<[1], [0], [0], [1], [0, 0, 1, 1], [], []>} : vector<4x4xf32>, vector<4x16xf32>, vector<4x16xf32> -> vector<4x16xf32>
    %186 = arith.addf %179, %185 : vector<4x16xf32>
    %c0_185 = arith.constant 0 : index
    %c0_186 = arith.constant 0 : index
    %c0_187 = arith.constant 0 : index
    %187 = vector.load %arg7[%c0_185, %c0_186, %c0_187] : memref<1x4x16xf32, #tpu.memory_space<vmem>>, vector<1x4x16xf32>
    %188 = vector.shape_cast %187 : vector<1x4x16xf32> to vector<4x16xf32>
    %189 = vector.shape_cast %186 : vector<4x16xf32> to vector<1x4x16xf32>
    tpu.vector_store %arg7[%c0_185, %c0_186, %c0_187], %189 {strides = array<i32>} : memref<1x4x16xf32, #tpu.memory_space<vmem>>, vector<1x4x16xf32>,
    return
  }
  func.func @transform_0(%arg0: i32) -> (i32, i32, i32) {
    %c0_i32 = arith.constant 0 : i32
    %c0_i32_0 = arith.constant 0 : i32
    %c0_i32_1 = arith.constant 0 : i32
    return %arg0, %c0_i32, %c0_i32_0 : i32, i32, i32
  }
  func.func @transform_1(%arg0: i32) -> (i32, i32) {
    %c0_i32 = arith.constant 0 : i32
    %c0_i32_0 = arith.constant 0 : i32
    %c0_i32_1 = arith.constant 0 : i32
    return %c0_i32, %c0_i32_0 : i32, i32
  }
  func.func @transform_2(%arg0: i32) -> (i32, i32) {
    %c0_i32 = arith.constant 0 : i32
    %c0_i32_0 = arith.constant 0 : i32
    %c0_i32_1 = arith.constant 0 : i32
    return %c0_i32, %c0_i32_0 : i32, i32
  }
  func.func @transform_3(%arg0: i32) -> (i32, i32, i32) {
    %c0_i32 = arith.constant 0 : i32
    %c0_i32_0 = arith.constant 0 : i32
    %c0_i32_1 = arith.constant 0 : i32
    %c0_i32_2 = arith.constant 0 : i32
    return %c0_i32, %c0_i32_0, %c0_i32_1 : i32, i32, i32
  }
  func.func @transform_4(%arg0: i32) -> (i32, i32, i32) {
    %c0_i32 = arith.constant 0 : i32
    %c0_i32_0 = arith.constant 0 : i32
    %c0_i32_1 = arith.constant 0 : i32
    %c0_i32_2 = arith.constant 0 : i32
    return %c0_i32, %c0_i32_0, %c0_i32_1 : i32, i32, i32
  }
  func.func @transform_5(%arg0: i32) -> (i32, i32) {
    %c0_i32 = arith.constant 0 : i32
    %c0_i32_0 = arith.constant 0 : i32
    %c0_i32_1 = arith.constant 0 : i32
    return %c0_i32, %c0_i32_0 : i32, i32
  }
  func.func @transform_6(%arg0: i32) -> (i32, i32, i32) {
    %c0_i32 = arith.constant 0 : i32
    %c0_i32_0 = arith.constant 0 : i32
    %c0_i32_1 = arith.constant 0 : i32
    return %arg0, %c0_i32, %c0_i32_0 : i32, i32, i32
  }
}

</mosaic_0001>

<bundles_post_ra>
// kernel: encoder_forward.1
= control target key start
LH: loop header
LB: loop body
LE: loop exit
PB: predicated region body
PF: predicated region fallthrough
CT: control target
= control target key end

     0   :  { %s2661_s21 = smov 0   ;;  %s4105_s0 = inlined_call_operand.vmem [shape: f32[2,75,121], index: 0, kind: input, shape index: {}]   ;;  %s4106_s1 = inlined_call_operand.vmem [shape: f32[4,75], index: 1, kind: input, shape index: {}]   ;;  %s4107_s2 = inlined_call_operand.vmem [shape: f32[4,1], index: 2, kind: input, shape index: {}]   ;;  %s4108_s3 = inlined_call_operand.vmem [shape: f32[25,121,16], index: 3, kind: input, shape index: {}]   ;;  %s4109_s4 = inlined_call_operand.vmem [shape: f32[25,4,4], index: 4, kind: input, shape index: {}]   ;;  %s4110_s5 = inlined_call_operand.vmem [shape: f32[4,1], index: 5, kind: input, shape index: {}]   ;;  %s4111_s6 = inlined_call_operand.vmem [shape: f32[2,4,16], index: 6, kind: output, shape index: {}]  }
   0x1 LB: > { %s2087_s22 = sadd.s32 4294967295, %s2623_s21   ;;  %p2091_p0 = scmp.ge.s32.totalorder %s2623_s21, 1  ;;  %s2623_s21 = sphi %s2661_s21, %s16_s21  }
   0x2   : > { %p212_p1 = scmp.lt.s32.totalorder %s2623_s21, 3 }
   0x4   : > { %p213_p2 = pnand %p2091_p0, %p212_p1 }
   0x5   : > { %p241_p3 = scmp.lt.s32.totalorder (!%p213_p2), %s2087_s22, 1 }
   0x6   : > { %216 = sbr.rel (%p213_p2) target bundleno = 3354 (0xd1a), region = 44 }
   0xb   : > { %v2625_v0 = vmov 0   ;;  %v261_v1 = vld [vmem:[%s4107_s2] sm:$0xf]  ;;  %vm322_vm0 = vcmask 1040384   ;;  %v2114_v2 = vld [vmem:[%s4108_s3 + $0xf0] sm:$0xff]  ;;  %s4113_s22 = smov (!%p241_p3, %s2087_s22), 1 }
   0xc   : > { %2616 = vset.pattern.permute.xlu0 %v2625_v0  ;;  %v2115_v3 = vld [vmem:[%s4108_s3 + $0xf8] sm:$0x1]  ;;  %v2135_v5 = vld [vmem:[%s4108_s3 + $0x170] sm:$0xff]  ;;  %s2606_s9 = smul.u32 80, %s4113_s22  ;;  %v2113_v6 = vld [vmem:[%s4108_s3 + $0xe8] sm:$0xff]  ;;  %vm271_vm1 = vcmask 1042432  }
   0xd   : > { %264 = vperm.xlu0 %2616, %v261_v1   ;;  %v2136_v4 = vld [vmem:[%s4108_s3 + $0x178] sm:$0x1]  ;;  %2116 = vmatpush.msk.msra.mxu3 %vm322_vm0, %v2115_v3  ;;  %v2134_v7 = vld [vmem:[%s4108_s3 + $0x168] sm:$0xff]  ;;  %v2112_v8 = vld [vmem:[%s4108_s3 + $0xe0] sm:$0xff]  ;;  %vm267_vm2 = vcmask 613376   ;;  %vm318_vm3 = vcmask 990208  }
   0xe   : > { %2137 = vmatpush.msk.msra.mxu2 %vm322_vm0, %v2136_v4  ;;  %s2698_s16 = scalar_lea.vmem %s4105_s0, %s2606_s9  ;;  %v2133_v9 = vld [vmem:[%s4108_s3 + $0x160] sm:$0xff]  ;;  %v2111_v13 = vld [vmem:[%s4108_s3 + $0xd8] sm:$0xff]  ;;  %v2110_v16 = vld [vmem:[%s4108_s3 + $0xd0] sm:$0xff]  ;;  %vm351_vm4 = vcmask 1043456   ;;  %vm347_vm5 = vcmask 31744   ;;  %s2093_s27 = sshll.u32 %s4113_s22, 2 }
   0xf   : > { %397 = vmatpush.msra.mxu3 %v2114_v2  ;;  %v259_v10 = vld [vmem:[%s2698_s16 + $0x48] sm:$0x7]  ;;  %v258_v11 = vld [vmem:[%s2698_s16 + $0x40] sm:$0xff]  ;;  %v2132_v14 = vld [vmem:[%s4108_s3 + $0x158] sm:$0xff]  ;;  %s249_s30 = scalar_lea.vmem %s4111_s6, %s2093_s27  ;;  %vm2032_vm6 = vcmask 125952  }
  0x10   : > { %466 = vmatpush.msra.mxu2 %v2135_v5  ;;  %v296_v12 = vld [vmem:[%s4110_s5] sm:$0xf]  ;;  %2094 = vmatpush.msk.msra.mxu0 %vm271_vm1, %v259_v10  ;;  %v257_v15 = vld [vmem:[%s2698_s16 + $0x38] sm:$0xff]  ;;  %v2131_v17 = vld [vmem:[%s4108_s3 + $0x150] sm:$0xff] }
  0x11   : > { %398 = vmatpush.msra.mxu3 %v2113_v6  ;;  %v256_v18 = vld [vmem:[%s2698_s16 + $0x30] sm:$0xff]  ;;  %v2109_v19 = vld [vmem:[%s4108_s3 + $0xc8] sm:$0xff]  ;;  %v2108_v22 = vld [vmem:[%s4108_s3 + $0xc0] sm:$0xff] }
  0x12   : > { %467 = vmatpush.msra.mxu2 %v2134_v7  ;;  %282 = vmatpush.msra.mxu0 %v258_v11  ;;  %v2130_v20 = vld [vmem:[%s4108_s3 + $0x148] sm:$0xff]  ;;  %v2129_v23 = vld [vmem:[%s4108_s3 + $0x140] sm:$0xff]  ;;  %v317_v25 = vld [vmem:[%s4108_s3 + $0x78] sm:$0x1] }
  0x13   : > { %399 = vmatpush.msra.mxu3 %v2112_v8  ;;  %v255_v21 = vld [vmem:[%s2698_s16 + $0x28] sm:$0xff]  ;;  %v254_v24 = vld [vmem:[%s2698_s16 + $0x20] sm:$0xff]  ;;  %v2107_v26 = vld [vmem:[%s4108_s3 + $0xb8] sm:$0xff]  ;;  %2096 = vmatpush.msk.msra.mxu1 %vm322_vm0, %v317_v25 }
  0x14   : > { %468 = vmatpush.msra.mxu2 %v2133_v9  ;;  %283 = vmatpush.msra.mxu0 %v257_v15  ;;  %v2128_v27 = vld [vmem:[%s4108_s3 + $0x138] sm:$0xff]  ;;  %v316_v28 = vld [vmem:[%s4108_s3 + $0x70] sm:$0xff]  ;;  %v315_v30 = vld [vmem:[%s4108_s3 + $0x68] sm:$0xff] }
  0x15   : > { %299 = vperm.xlu0 %2616, %v296_v12   ;;  %400 = vmatpush.msra.mxu3 %v2111_v13  ;;  %v253_v29 = vld [vmem:[%s2698_s16 + $0x18] sm:$0xff]  ;;  %v2106_v31 = vld [vmem:[%s4108_s3 + $0xb0] sm:$0xff]  ;;  %v314_v34 = vld [vmem:[%s4108_s3 + $0x60] sm:$0xff] }
  0x16   : > { %469 = vmatpush.msra.mxu2 %v2132_v14  ;;  %284 = vmatpush.msra.mxu0 %v256_v18  ;;  %v2127_v32 = vld [vmem:[%s4108_s3 + $0x130] sm:$0xff]  ;;  %v2105_v35 = vld [vmem:[%s4108_s3 + $0xa8] sm:$0xff]  ;;  %v313_v38 = vld [vmem:[%s4108_s3 + $0x58] sm:$0xff] }
  0x17   : > { %401 = vmatpush.msra.mxu3 %v2110_v16  ;;  %327 = vmatpush.msra.mxu1 %v316_v28  ;;  %v252_v33 = vld [vmem:[%s2698_s16 + $0x10] sm:$0xff]  ;;  %v2126_v36 = vld [vmem:[%s4108_s3 + $0x128] sm:$0xff]  ;;  %v2104_v39 = vld [vmem:[%s4108_s3 + $0xa0] sm:$0xff] }
  0x18   : > { %470 = vmatpush.msra.mxu2 %v2131_v17  ;;  %285 = vmatpush.msra.mxu0 %v255_v21  ;;  %v251_v37 = vld [vmem:[%s2698_s16 + $0x8] sm:$0xff]  ;;  %v2125_v40 = vld [vmem:[%s4108_s3 + $0x120] sm:$0xff]  ;;  %v312_v42 = vld [vmem:[%s4108_s3 + $0x50] sm:$0xff] }
  0x19   : > { %402 = vmatpush.msra.mxu3 %v2109_v19  ;;  %328 = vmatpush.msra.mxu1 %v315_v30  ;;  %v250_v41 = vld [vmem:[%s2698_s16] sm:$0xff]  ;;  %v2103_v44 = vld [vmem:[%s4108_s3 + $0x98] sm:$0xff]  ;;  %v311_v46 = vld [vmem:[%s4108_s3 + $0x48] sm:$0xff] }
  0x1a   : > { %471 = vmatpush.msra.mxu2 %v2130_v20  ;;  %286 = vmatpush.msra.mxu0 %v254_v24  ;;  %v260_v43 = vld [vmem:[%s4106_s1] sm:$0xf]  ;;  %v2124_v45 = vld [vmem:[%s4108_s3 + $0x118] sm:$0xff]  ;;  %v2102_v47 = vld [vmem:[%s4108_s3 + $0x90] sm:$0xff] }
  0x1b   : > { %403 = vmatpush.msra.mxu3 %v2108_v22  ;;  %329 = vmatpush.msra.mxu1 %v314_v34  ;;  %v2123_v48 = vld [vmem:[%s4108_s3 + $0x110] sm:$0xff]  ;;  %v310_v49 = vld [vmem:[%s4108_s3 + $0x40] sm:$0xff]  ;;  %v2101_v50 = vld [vmem:[%s4108_s3 + $0x88] sm:$0xff] }
  0x1c   : > { %472 = vmatpush.msra.mxu2 %v2129_v23  ;;  %287 = vmatpush.msra.mxu0 %v253_v29  ;;  %v2122_v51 = vld [vmem:[%s4108_s3 + $0x108] sm:$0xff]  ;;  %v309_v52 = vld [vmem:[%s4108_s3 + $0x38] sm:$0xff]  ;;  %v2100_v53 = vld [vmem:[%s4108_s3 + $0x80] sm:$0xff] }
  0x1d   : > { %404 = vmatpush.msra.mxu3 %v2107_v26  ;;  %330 = vmatpush.msra.mxu1 %v313_v38  ;;  %v2121_v54 = vld [vmem:[%s4108_s3 + $0x100] sm:$0xff]  ;;  %v2178_v55 = vld [vmem:[%s4108_s3 + $0x278] sm:$0x1]  ;;  %v308_v57 = vld [vmem:[%s4108_s3 + $0x30] sm:$0xff] }
  0x1e   : > { %473 = vmatpush.msra.mxu2 %v2128_v27  ;;  %288 = vmatpush.msra.mxu0 %v252_v33  ;;  %v2199_v56 = vld [vmem:[%s4108_s3 + $0x2f8] sm:$0x1]  ;;  %v2177_v58 = vld [vmem:[%s4108_s3 + $0x270] sm:$0xff]  ;;  %v2176_v60 = vld [vmem:[%s4108_s3 + $0x268] sm:$0xff] }
  0x1f   : > { %405 = vmatpush.msra.mxu3 %v2106_v31  ;;  %331 = vmatpush.msra.mxu1 %v312_v42  ;;  %v2198_v59 = vld [vmem:[%s4108_s3 + $0x2f0] sm:$0xff]  ;;  %v2197_v61 = vld [vmem:[%s4108_s3 + $0x2e8] sm:$0xff]  ;;  %v2175_v62 = vld [vmem:[%s4108_s3 + $0x260] sm:$0xff] }
  0x20   : > { %474 = vmatpush.msra.mxu2 %v2127_v32  ;;  %289 = vmatpush.msra.mxu0 %v251_v37  ;;  %v2196_v63 = vld [vmem:[%s4108_s3 + $0x2e0] sm:$0xff]  ;;  %v2174_v0 = vld [vmem:[%s4108_s3 + $0x258] sm:$0xff]  ;;  %v2173_v2 = vld [vmem:[%s4108_s3 + $0x250] sm:$0xff] }
  0x21   : > { %406 = vmatpush.msra.mxu3 %v2105_v35  ;;  %332 = vmatpush.msra.mxu1 %v311_v46  ;;  %v2195_v1 = vld [vmem:[%s4108_s3 + $0x2d8] sm:$0xff]  ;;  %v2194_v3 = vld [vmem:[%s4108_s3 + $0x2d0] sm:$0xff]  ;;  %v2172_v4 = vld [vmem:[%s4108_s3 + $0x248] sm:$0xff] }
  0x22   : > { %475 = vmatpush.msra.mxu2 %v2126_v36  ;;  %290 = vmatpush.msra.mxu0 %v250_v41  ;;  %v2193_v5 = vld [vmem:[%s4108_s3 + $0x2c8] sm:$0xff]  ;;  %v2171_v6 = vld [vmem:[%s4108_s3 + $0x240] sm:$0xff]  ;;  %v2170_v8 = vld [vmem:[%s4108_s3 + $0x238] sm:$0xff] }
  0x23   : > { %407 = vmatpush.msra.mxu3 %v2104_v39  ;;  %2095 = vmatmul.msk.f32.vlgmr.msra.gmra.mxu0 %vm267_vm2, %v260_v43  ;;  %v2192_v7 = vld [vmem:[%s4108_s3 + $0x2c0] sm:$0xff]  ;;  %v2191_v9 = vld [vmem:[%s4108_s3 + $0x2b8] sm:$0xff]  ;;  %v2169_v10 = vld [vmem:[%s4108_s3 + $0x230] sm:$0xff] }
  0x24   : > { %476 = vmatpush.msra.mxu2 %v2125_v40  ;;  %333 = vmatpush.msra.mxu1 %v310_v49  ;;  %v2190_v11 = vld [vmem:[%s4108_s3 + $0x2b0] sm:$0xff]  ;;  %v307_v12 = vld [vmem:[%s4108_s3 + $0x28] sm:$0xff]  ;;  %v306_v15 = vld [vmem:[%s4108_s3 + $0x20] sm:$0xff] }
  0x25   : > { %408 = vmatpush.msra.mxu3 %v2103_v44  ;;  %v2168_v13 = vld [vmem:[%s4108_s3 + $0x228] sm:$0xff]  ;;  %v2167_v16 = vld [vmem:[%s4108_s3 + $0x220] sm:$0xff]  ;;  %v305_v18 = vld [vmem:[%s4108_s3 + $0x18] sm:$0xff] }
  0x26   : > { %477 = vmatpush.msra.mxu2 %v2124_v45  ;;  %334 = vmatpush.msra.mxu1 %v309_v52  ;;  %v2189_v14 = vld [vmem:[%s4108_s3 + $0x2a8] sm:$0xff]  ;;  %v2188_v17 = vld [vmem:[%s4108_s3 + $0x2a0] sm:$0xff]  ;;  %v2166_v19 = vld [vmem:[%s4108_s3 + $0x218] sm:$0xff] }
  0x27   : > { %409 = vmatpush.msra.mxu3 %v2102_v47  ;;  %v2187_v20 = vld [vmem:[%s4108_s3 + $0x298] sm:$0xff]  ;;  %v304_v21 = vld [vmem:[%s4108_s3 + $0x10] sm:$0xff]  ;;  %v303_v24 = vld [vmem:[%s4108_s3 + $0x8] sm:$0xff] }
  0x28   : > { %478 = vmatpush.msra.mxu2 %v2123_v48  ;;  %335 = vmatpush.msra.mxu1 %v308_v57  ;;  %v2165_v22 = vld [vmem:[%s4108_s3 + $0x210] sm:$0xff]  ;;  %v2164_v25 = vld [vmem:[%s4108_s3 + $0x208] sm:$0xff]  ;;  %v302_v27 = vld [vmem:[%s4108_s3] sm:$0xff] }
  0x29   : > { %410 = vmatpush.msra.mxu3 %v2101_v50  ;;  %v2186_v23 = vld [vmem:[%s4108_s3 + $0x290] sm:$0xff]  ;;  %v2185_v26 = vld [vmem:[%s4108_s3 + $0x288] sm:$0xff]  ;;  %v2163_v28 = vld [vmem:[%s4108_s3 + $0x200] sm:$0xff] }
  0x2a   : > { %479 = vmatpush.msra.mxu2 %v2122_v51  ;;  %336 = vmatpush.msra.mxu1 %v307_v12  ;;  %v2184_v29 = vld [vmem:[%s4108_s3 + $0x280] sm:$0xff]  ;;  %v2241_v34 = vld [vmem:[%s4108_s3 + $0x3f8] sm:$0x1]  ;;  %v2240_v36 = vld [vmem:[%s4108_s3 + $0x3f0] sm:$0xff] }
  0x2b   : > { %411 = vmatpush.msra.mxu3 %v2100_v53  ;;  %v2262_v35 = vld [vmem:[%s4108_s3 + $0x478] sm:$0x1]  ;;  %v2261_v37 = vld [vmem:[%s4108_s3 + $0x470] sm:$0xff]  ;;  %v2239_v38 = vld [vmem:[%s4108_s3 + $0x3e8] sm:$0xff] }
  0x2c   : > { %480 = vmatpush.msra.mxu2 %v2121_v54  ;;  %337 = vmatpush.msra.mxu1 %v306_v15  ;;  %v2260_v39 = vld [vmem:[%s4108_s3 + $0x468] sm:$0xff]  ;;  %v2238_v40 = vld [vmem:[%s4108_s3 + $0x3e0] sm:$0xff]  ;;  %v2237_v42 = vld [vmem:[%s4108_s3 + $0x3d8] sm:$0xff] }
  0x2d   : > { %2179 = vmatpush.msk.msrb.mxu3 %vm322_vm0, %v2178_v55  ;;  %v2259_v41 = vld [vmem:[%s4108_s3 + $0x460] sm:$0xff]  ;;  %v2258_v43 = vld [vmem:[%s4108_s3 + $0x458] sm:$0xff]  ;;  %v2236_v44 = vld [vmem:[%s4108_s3 + $0x3d0] sm:$0xff] }
  0x2e   : > { %2200 = vmatpush.msk.msrb.mxu2 %vm322_vm0, %v2199_v56  ;;  %338 = vmatpush.msra.mxu1 %v305_v18  ;;  %v2257_v45 = vld [vmem:[%s4108_s3 + $0x450] sm:$0xff]  ;;  %v2235_v46 = vld [vmem:[%s4108_s3 + $0x3c8] sm:$0xff]  ;;  %v2234_v48 = vld [vmem:[%s4108_s3 + $0x3c0] sm:$0xff] }
  0x2f   : > { %604 = vmatpush.msrb.mxu3 %v2177_v58  ;;  %v2256_v47 = vld [vmem:[%s4108_s3 + $0x448] sm:$0xff]  ;;  %v2255_v49 = vld [vmem:[%s4108_s3 + $0x440] sm:$0xff]  ;;  %v2233_v50 = vld [vmem:[%s4108_s3 + $0x3b8] sm:$0xff] }
  0x30   : > { %673 = vmatpush.msrb.mxu2 %v2198_v59  ;;  %339 = vmatpush.msra.mxu1 %v304_v21  ;;  %v2254_v51 = vld [vmem:[%s4108_s3 + $0x438] sm:$0xff]  ;;  %v2232_v52 = vld [vmem:[%s4108_s3 + $0x3b0] sm:$0xff]  ;;  %v2231_v54 = vld [vmem:[%s4108_s3 + $0x3a8] sm:$0xff] }
  0x31   : > { %605 = vmatpush.msrb.mxu3 %v2176_v60  ;;  %v2253_v53 = vld [vmem:[%s4108_s3 + $0x430] sm:$0xff]  ;;  %v2252_v55 = vld [vmem:[%s4108_s3 + $0x428] sm:$0xff]  ;;  %v2230_v56 = vld [vmem:[%s4108_s3 + $0x3a0] sm:$0xff] }
  0x32   : > { %674 = vmatpush.msrb.mxu2 %v2197_v61  ;;  %340 = vmatpush.msra.mxu1 %v303_v24  ;;  %v2251_v57 = vld [vmem:[%s4108_s3 + $0x420] sm:$0xff]  ;;  %v2229_v58 = vld [vmem:[%s4108_s3 + $0x398] sm:$0xff]  ;;  %v2228_v60 = vld [vmem:[%s4108_s3 + $0x390] sm:$0xff] }
  0x33   : > { %606 = vmatpush.msrb.mxu3 %v2175_v62  ;;  %v2250_v59 = vld [vmem:[%s4108_s3 + $0x418] sm:$0xff]  ;;  %v2249_v61 = vld [vmem:[%s4108_s3 + $0x410] sm:$0xff]  ;;  %v2227_v62 = vld [vmem:[%s4108_s3 + $0x388] sm:$0xff] }
  0x34   : > { %675 = vmatpush.msrb.mxu2 %v2196_v63  ;;  %341 = vmatpush.msra.mxu1 %v302_v27  ;;  %v2248_v63 = vld [vmem:[%s4108_s3 + $0x408] sm:$0xff]  ;;  %v2153_v12 = vld [vmem:[%s4108_s3 + $0x1d8] sm:$0xff]  ;;  %v2150_v15 = vld [vmem:[%s4108_s3 + $0x1c0] sm:$0xff] }
  0x35   : > { %607 = vmatpush.msrb.mxu3 %v2174_v0  ;;  %v2226_v0 = vld [vmem:[%s4108_s3 + $0x380] sm:$0xff]  ;;  %v2147_v18 = vld [vmem:[%s4108_s3 + $0x1a8] sm:$0xff]  ;;  %v2144_v21 = vld [vmem:[%s4108_s3 + $0x190] sm:$0xff] }
  0x36   : > { %676 = vmatpush.msrb.mxu2 %v2195_v1  ;;  %v2247_v1 = vld [vmem:[%s4108_s3 + $0x400] sm:$0xff] }
  0x37   : > { %608 = vmatpush.msrb.mxu3 %v2173_v2  ;;  %v346_v2 = vld [vmem:[%s4109_s4] sm:$0xf] }
  0x38   : > { %677 = vmatpush.msrb.mxu2 %v2194_v3 }
  0x39   : > { %609 = vmatpush.msrb.mxu3 %v2172_v4  ;;  %v2118_v4 = vld [vmem:[%s4109_s4 + $0x4] sm:$0xf] }
  0x3a   : > { %678 = vmatpush.msrb.mxu2 %v2193_v5 }
  0x3b   : > { %610 = vmatpush.msrb.mxu3 %v2171_v6  ;;  %v2157_v6 = vld [vmem:[%s4108_s3 + $0x1f8] sm:$0x1] }
  0x3c   : > { %679 = vmatpush.msrb.mxu2 %v2192_v7 }
  0x3d   : > { %611 = vmatpush.msrb.mxu3 %v2170_v8  ;;  %v2139_v8 = vld [vmem:[%s4109_s4 + $0x8] sm:$0xf] }
  0x3e   : > { %680 = vmatpush.msrb.mxu2 %v2191_v9  ;;  %v2156_v9 = vld [vmem:[%s4108_s3 + $0x1f0] sm:$0xff] }
  0x3f   : > { %612 = vmatpush.msrb.mxu3 %v2169_v10  ;;  %v2155_v10 = vld [vmem:[%s4108_s3 + $0x1e8] sm:$0xff] }
  0x40   : > { %681 = vmatpush.msrb.mxu2 %v2190_v11  ;;  %v2154_v11 = vld [vmem:[%s4108_s3 + $0x1e0] sm:$0xff] }
  0x41   : > { %613 = vmatpush.msrb.mxu3 %v2168_v13  ;;  %v2152_v13 = vld [vmem:[%s4108_s3 + $0x1d0] sm:$0xff] }
  0x42   : > { %682 = vmatpush.msrb.mxu2 %v2189_v14  ;;  %v2151_v14 = vld [vmem:[%s4108_s3 + $0x1c8] sm:$0xff] }
  0x43   : > { %614 = vmatpush.msrb.mxu3 %v2167_v16  ;;  %v2149_v16 = vld [vmem:[%s4108_s3 + $0x1b8] sm:$0xff] }
  0x44   : > { %683 = vmatpush.msrb.mxu2 %v2188_v17  ;;  %v2148_v17 = vld [vmem:[%s4108_s3 + $0x1b0] sm:$0xff] }
  0x45   : > { %615 = vmatpush.msrb.mxu3 %v2166_v19  ;;  %v2146_v19 = vld [vmem:[%s4108_s3 + $0x1a0] sm:$0xff] }
  0x46   : > { %684 = vmatpush.msrb.mxu2 %v2187_v20  ;;  %v2145_v20 = vld [vmem:[%s4108_s3 + $0x198] sm:$0xff] }
  0x47   : > { %616 = vmatpush.msrb.mxu3 %v2165_v22  ;;  %v2143_v22 = vld [vmem:[%s4108_s3 + $0x188] sm:$0xff] }
  0x48   : > { %685 = vmatpush.msrb.mxu2 %v2186_v23  ;;  %v2142_v23 = vld [vmem:[%s4108_s3 + $0x180] sm:$0xff] }
  0x49   : > { %617 = vmatpush.msrb.mxu3 %v2164_v25 }
  0x4a   : > { %686 = vmatpush.msrb.mxu2 %v2185_v26 }
  0x4b   : > { %618 = vmatpush.msrb.mxu3 %v2163_v28 }
  0x4c   : > { %687 = vmatpush.msrb.mxu2 %v2184_v29 }
  0x7f   : > { %v265_v30 = vpop.permute.xlu0 %264 }
  0x87   : > { %v300_v25 = vpop.permute.xlu0 %299 }
  0xa0   : > { %v292_v31 = vpop.f32.mrf.mxu0 }
  0xa1   : > { %v293_v32 = vadd.f32 %v292_v31, %v265_v30  ;;  %v2160_v31 = vld [vmem:[%s4109_s4 + $0xc] sm:$0xf] }
  0xa3   : > { %v2941_v33 = vmax.f32 %v293_v32, 0.0 }
  0xa5   : > { %2097 = vmatmul.msk.f32.vlgmr.msra.gmra.mxu1 %vm318_vm3, %v2941_v33  ;;  %2117 = vmatmul.msk.f32.vlgmr.msra.gmra.mxu3 %vm318_vm3, %v2941_v33 }
  0xa6   : > { %2138 = vmatmul.msk.f32.vlgmr.msra.gmra.mxu2 %vm318_vm3, %v2941_v33  ;;  %2242 = vmatpush.msk.msra.mxu3 %vm322_vm0, %v2241_v34 }
  0xa7   : > { %2263 = vmatpush.msk.msra.mxu2 %vm322_vm0, %v2262_v35 }
  0xa8   : > { %811 = vmatpush.msra.mxu3 %v2240_v36  ;;  %v2181_v36 = vld [vmem:[%s4109_s4 + $0x10] sm:$0xf] }
  0xa9   : > { %880 = vmatpush.msra.mxu2 %v2261_v37  ;;  %v2220_v37 = vld [vmem:[%s4108_s3 + $0x378] sm:$0x1] }
  0xaa   : > { %812 = vmatpush.msra.mxu3 %v2239_v38  ;;  %v2219_v38 = vld [vmem:[%s4108_s3 + $0x370] sm:$0xff] }
  0xab   : > { %881 = vmatpush.msra.mxu2 %v2260_v39  ;;  %v2218_v39 = vld [vmem:[%s4108_s3 + $0x368] sm:$0xff] }
  0xac   : > { %813 = vmatpush.msra.mxu3 %v2238_v40  ;;  %v2217_v40 = vld [vmem:[%s4108_s3 + $0x360] sm:$0xff] }
  0xad   : > { %882 = vmatpush.msra.mxu2 %v2259_v41  ;;  %2180 = vmatmul.msk.f32.vlgmr.msrb.gmra.mxu3 %vm318_vm3, %v2941_v33  ;;  %v2202_v41 = vld [vmem:[%s4109_s4 + $0x14] sm:$0xf] }
  0xae   : > { %2201 = vmatmul.msk.f32.vlgmr.msrb.gmra.mxu2 %vm318_vm3, %v2941_v33  ;;  %814 = vmatpush.msra.mxu3 %v2237_v42  ;;  %v2216_v42 = vld [vmem:[%s4108_s3 + $0x358] sm:$0xff] }
  0xaf   : > { %883 = vmatpush.msra.mxu2 %v2258_v43  ;;  %v2215_v43 = vld [vmem:[%s4108_s3 + $0x350] sm:$0xff] }
  0xb0   : > { %815 = vmatpush.msra.mxu3 %v2236_v44  ;;  %v2214_v44 = vld [vmem:[%s4108_s3 + $0x348] sm:$0xff] }
  0xb1   : > { %884 = vmatpush.msra.mxu2 %v2257_v45  ;;  %v2213_v45 = vld [vmem:[%s4108_s3 + $0x340] sm:$0xff] }
  0xb2   : > { %816 = vmatpush.msra.mxu3 %v2235_v46  ;;  %v2212_v46 = vld [vmem:[%s4108_s3 + $0x338] sm:$0xff] }
  0xb3   : > { %885 = vmatpush.msra.mxu2 %v2256_v47  ;;  %v2211_v47 = vld [vmem:[%s4108_s3 + $0x330] sm:$0xff] }
  0xb4   : > { %817 = vmatpush.msra.mxu3 %v2234_v48  ;;  %v2210_v48 = vld [vmem:[%s4108_s3 + $0x328] sm:$0xff] }
  0xb5   : > { %886 = vmatpush.msra.mxu2 %v2255_v49  ;;  %v2209_v49 = vld [vmem:[%s4108_s3 + $0x320] sm:$0xff] }
  0xb6   : > { %818 = vmatpush.msra.mxu3 %v2233_v50  ;;  %v2208_v50 = vld [vmem:[%s4108_s3 + $0x318] sm:$0xff] }
  0xb7   : > { %887 = vmatpush.msra.mxu2 %v2254_v51  ;;  %v2207_v51 = vld [vmem:[%s4108_s3 + $0x310] sm:$0xff] }
  0xb8   : > { %819 = vmatpush.msra.mxu3 %v2232_v52  ;;  %v2206_v52 = vld [vmem:[%s4108_s3 + $0x308] sm:$0xff] }
  0xb9   : > { %888 = vmatpush.msra.mxu2 %v2253_v53  ;;  %v2205_v53 = vld [vmem:[%s4108_s3 + $0x300] sm:$0xff] }
  0xba   : > { %820 = vmatpush.msra.mxu3 %v2231_v54 }
  0xbb   : > { %889 = vmatpush.msra.mxu2 %v2252_v55 }
  0xbc   : > { %821 = vmatpush.msra.mxu3 %v2230_v56 }
  0xbd   : > { %890 = vmatpush.msra.mxu2 %v2251_v57 }
  0xbe   : > { %822 = vmatpush.msra.mxu3 %v2229_v58 }
  0xbf   : > { %891 = vmatpush.msra.mxu2 %v2250_v59 }
  0xc0   : > { %823 = vmatpush.msra.mxu3 %v2228_v60  ;;  %v2223_v60 = vld [vmem:[%s4109_s4 + $0x18] sm:$0xf] }
  0xc1   : > { %892 = vmatpush.msra.mxu2 %v2249_v61 }
  0xc2   : > { %824 = vmatpush.msra.mxu3 %v2227_v62 }
  0xc3   : > { %893 = vmatpush.msra.mxu2 %v2248_v63 }
  0xc4   : > { %825 = vmatpush.msra.mxu3 %v2226_v0  ;;  %v2244_v0 = vld [vmem:[%s4109_s4 + $0x1c] sm:$0xf] }
  0xc5   : > { %894 = vmatpush.msra.mxu2 %v2247_v1  ;;  %2243 = vmatmul.msk.f32.vlgmr.msra.gmra.mxu3 %vm318_vm3, %v2941_v33  ;;  %v2283_v1 = vld [vmem:[%s4108_s3 + $0x4f8] sm:$0x1] }
  0xc6   : > { %2264 = vmatmul.msk.f32.vlgmr.msra.gmra.mxu2 %vm318_vm3, %v2941_v33 }
 0x122   : > { %v343_v3 = vpop.f32.mrf.mxu1 }
 0x123   : > { %2098 = vmatpush.msk.msrb.mxu0 %vm351_vm4, %v343_v3  ;;  %v2281_v3 = vld [vmem:[%s4108_s3 + $0x4e8] sm:$0xff] }
 0x124   : > { %2099 = vmatmul.msk.f32.vlgmr.msrb.gmra.mxu0 %vm347_vm5, %v346_v2  ;;  %v2282_v2 = vld [vmem:[%s4108_s3 + $0x4f0] sm:$0xff] }
 0x128   : > { %v413_v5 = vpop.f32.mrf.mxu3 }
 0x129   : > { %v482_v7 = vpop.f32.mrf.mxu2  ;;  %2119 = vmatpush.msk.msrb.mxu1 %vm351_vm4, %v413_v5  ;;  %v2265_v5 = vld [vmem:[%s4109_s4 + $0x20] sm:$0xf] }
 0x12a   : > { %2140 = vmatpush.msk.msra.mxu0 %vm351_vm4, %v482_v7  ;;  %2120 = vmatmul.msk.f32.vlgmr.msrb.gmra.mxu1 %vm347_vm5, %v2118_v4  ;;  %v2280_v4 = vld [vmem:[%s4108_s3 + $0x4e0] sm:$0xff]  ;;  %v2278_v7 = vld [vmem:[%s4108_s3 + $0x4d0] sm:$0xff] }
 0x12c   : > { %2158 = vmatpush.msk.msrb.mxu0 %vm322_vm0, %v2157_v6  ;;  %v2279_v6 = vld [vmem:[%s4108_s3 + $0x4d8] sm:$0xff] }
 0x12d   : > { %2141 = vmatmul.msk.f32.vlgmr.msra.gmra.mxu0 %vm347_vm5, %v2139_v8  ;;  %v2277_v8 = vld [vmem:[%s4108_s3 + $0x4c8] sm:$0xff] }
 0x12e   : > { %535 = vmatpush.msrb.mxu0 %v2156_v9  ;;  %v2276_v9 = vld [vmem:[%s4108_s3 + $0x4c0] sm:$0xff] }
 0x130   : > { %536 = vmatpush.msrb.mxu0 %v2155_v10  ;;  %v620_v34 = vpop.f32.mrf.mxu3  ;;  %v2275_v10 = vld [vmem:[%s4108_s3 + $0x4b8] sm:$0xff] }
 0x131   : > { %v689_v35 = vpop.f32.mrf.mxu2 }
 0x132   : > { %537 = vmatpush.msrb.mxu0 %v2154_v11  ;;  %v2274_v11 = vld [vmem:[%s4108_s3 + $0x4b0] sm:$0xff] }
 0x134   : > { %538 = vmatpush.msrb.mxu0 %v2153_v12  ;;  %v2273_v12 = vld [vmem:[%s4108_s3 + $0x4a8] sm:$0xff] }
 0x136   : > { %539 = vmatpush.msrb.mxu0 %v2152_v13  ;;  %v2272_v13 = vld [vmem:[%s4108_s3 + $0x4a0] sm:$0xff] }
 0x138   : > { %540 = vmatpush.msrb.mxu0 %v2151_v14  ;;  %v2271_v14 = vld [vmem:[%s4108_s3 + $0x498] sm:$0xff] }
 0x13a   : > { %541 = vmatpush.msrb.mxu0 %v2150_v15  ;;  %v2270_v15 = vld [vmem:[%s4108_s3 + $0x490] sm:$0xff] }
 0x13c   : > { %542 = vmatpush.msrb.mxu0 %v2149_v16  ;;  %v2269_v16 = vld [vmem:[%s4108_s3 + $0x488] sm:$0xff] }
 0x13e   : > { %543 = vmatpush.msrb.mxu0 %v2148_v17  ;;  %v2268_v17 = vld [vmem:[%s4108_s3 + $0x480] sm:$0xff] }
 0x140   : > { %544 = vmatpush.msrb.mxu0 %v2147_v18 }
 0x142   : > { %545 = vmatpush.msrb.mxu0 %v2146_v19 }
 0x144   : > { %546 = vmatpush.msrb.mxu0 %v2145_v20 }
 0x146   : > { %547 = vmatpush.msrb.mxu0 %v2144_v21 }
 0x148   : > { %548 = vmatpush.msrb.mxu0 %v2143_v22  ;;  %v827_v62 = vpop.f32.mrf.mxu3 }
 0x149   : > { %v896_v63 = vpop.f32.mrf.mxu2 }
 0x14a   : > { %549 = vmatpush.msrb.mxu0 %v2142_v23 }
 0x14b   : > { %2159 = vmatmul.msk.f32.vlgmr.msrb.gmra.mxu0 %vm318_vm3, %v2941_v33 }
 0x1a1   : > { %v372_v24 = vpop.f32.mrf.mxu0 }
 0x1a2   : > { %v375_v26 = vadd.f32 %v372_v24, %v300_v25  ;;  %v2286_v24 = vld [vmem:[%s4109_s4 + $0x24] sm:$0xf] }
 0x1a7   : > { %v441_v27 = vpop.f32.mrf.mxu1 }
 0x1a8   : > { %v444_v28 = vadd.f32 %v441_v27, %v375_v26  ;;  %v2304_v26 = vld [vmem:[%s4108_s3 + $0x578] sm:$0x1]  ;;  %v2303_v27 = vld [vmem:[%s4108_s3 + $0x570] sm:$0xff] }
 0x1aa   : > { %v510_v29 = vpop.f32.mrf.mxu0 }
 0x1ab   : > { %v513_v30 = vadd.f32 %v510_v29, %v444_v28  ;;  %v2302_v28 = vld [vmem:[%s4108_s3 + $0x568] sm:$0xff]  ;;  %v2301_v29 = vld [vmem:[%s4108_s3 + $0x560] sm:$0xff] }
 0x1c8   : > { %v551_v32 = vpop.f32.mrf.mxu0 }
 0x1c9   : > { %2161 = vmatpush.msk.msra.mxu1 %vm351_vm4, %v551_v32  ;;  %v2298_v32 = vld [vmem:[%s4108_s3 + $0x548] sm:$0xff] }
 0x1ca   : > { %2162 = vmatmul.msk.f32.vlgmr.msra.gmra.mxu1 %vm347_vm5, %v2160_v31  ;;  %v2299_v31 = vld [vmem:[%s4108_s3 + $0x550] sm:$0xff] }
 0x1cb   : > { %2182 = vmatpush.msk.msrb.mxu1 %vm351_vm4, %v620_v34  ;;  %v2297_v34 = vld [vmem:[%s4108_s3 + $0x540] sm:$0xff] }
 0x1cd   : > { %2203 = vmatpush.msk.msra.mxu1 %vm351_vm4, %v689_v35  ;;  %v2296_v35 = vld [vmem:[%s4108_s3 + $0x538] sm:$0xff] }
 0x1d2   : > { %2183 = vmatmul.msk.f32.vlgmr.msrb.gmra.mxu1 %vm347_vm5, %v2181_v36  ;;  %v2295_v36 = vld [vmem:[%s4108_s3 + $0x530] sm:$0xff] }
 0x1d3   : > { %2221 = vmatpush.msk.msrb.mxu1 %vm322_vm0, %v2220_v37  ;;  %v2294_v37 = vld [vmem:[%s4108_s3 + $0x528] sm:$0xff] }
 0x1d5   : > { %742 = vmatpush.msrb.mxu1 %v2219_v38  ;;  %v2293_v38 = vld [vmem:[%s4108_s3 + $0x520] sm:$0xff] }
 0x1d7   : > { %743 = vmatpush.msrb.mxu1 %v2218_v39  ;;  %v2292_v39 = vld [vmem:[%s4108_s3 + $0x518] sm:$0xff] }
 0x1d9   : > { %744 = vmatpush.msrb.mxu1 %v2217_v40  ;;  %v2291_v40 = vld [vmem:[%s4108_s3 + $0x510] sm:$0xff] }
 0x1da   : > { %2204 = vmatmul.msk.f32.vlgmr.msra.gmra.mxu1 %vm347_vm5, %v2202_v41  ;;  %v2290_v41 = vld [vmem:[%s4108_s3 + $0x508] sm:$0xff] }
 0x1db   : > { %745 = vmatpush.msrb.mxu1 %v2216_v42  ;;  %v2289_v42 = vld [vmem:[%s4108_s3 + $0x500] sm:$0xff] }
 0x1dd   : > { %746 = vmatpush.msrb.mxu1 %v2215_v43 }
 0x1df   : > { %747 = vmatpush.msrb.mxu1 %v2214_v44 }
 0x1e1   : > { %748 = vmatpush.msrb.mxu1 %v2213_v45  ;;  %v2307_v45 = vld [vmem:[%s4109_s4 + $0x28] sm:$0xf] }
 0x1e3   : > { %749 = vmatpush.msrb.mxu1 %v2212_v46 }
 0x1e5   : > { %750 = vmatpush.msrb.mxu1 %v2211_v47  ;;  %v2325_v47 = vld [vmem:[%s4108_s3 + $0x5f8] sm:$0x1] }
 0x1e7   : > { %751 = vmatpush.msrb.mxu1 %v2210_v48  ;;  %v2324_v48 = vld [vmem:[%s4108_s3 + $0x5f0] sm:$0xff] }
 0x1e9   : > { %752 = vmatpush.msrb.mxu1 %v2209_v49  ;;  %v2323_v49 = vld [vmem:[%s4108_s3 + $0x5e8] sm:$0xff] }
 0x1eb   : > { %753 = vmatpush.msrb.mxu1 %v2208_v50  ;;  %v2322_v50 = vld [vmem:[%s4108_s3 + $0x5e0] sm:$0xff] }
 0x1ed   : > { %754 = vmatpush.msrb.mxu1 %v2207_v51  ;;  %v2321_v51 = vld [vmem:[%s4108_s3 + $0x5d8] sm:$0xff] }
 0x1ef   : > { %755 = vmatpush.msrb.mxu1 %v2206_v52  ;;  %v2320_v52 = vld [vmem:[%s4108_s3 + $0x5d0] sm:$0xff] }
 0x1f1   : > { %756 = vmatpush.msrb.mxu1 %v2205_v53  ;;  %v2319_v53 = vld [vmem:[%s4108_s3 + $0x5c8] sm:$0xff] }
 0x1f2   : > { %2222 = vmatmul.msk.f32.vlgmr.msrb.gmra.mxu1 %vm318_vm3, %v2941_v33 }
 0x247   : > { %v579_v54 = vpop.f32.mrf.mxu1 }
 0x248   : > { %v582_v55 = vadd.f32 %v579_v54, %v513_v30  ;;  %v2300_v30 = vld [vmem:[%s4108_s3 + $0x558] sm:$0xff]  ;;  %v2318_v54 = vld [vmem:[%s4108_s3 + $0x5c0] sm:$0xff] }
 0x24f   : > { %v648_v56 = vpop.f32.mrf.mxu1 }
 0x250   : > { %v651_v57 = vadd.f32 %v648_v56, %v582_v55  ;;  %v2317_v55 = vld [vmem:[%s4108_s3 + $0x5b8] sm:$0xff]  ;;  %v2316_v56 = vld [vmem:[%s4108_s3 + $0x5b0] sm:$0xff] }
 0x257   : > { %v717_v58 = vpop.f32.mrf.mxu1 }
 0x258   : > { %v720_v59 = vadd.f32 %v717_v58, %v651_v57  ;;  %v2315_v57 = vld [vmem:[%s4108_s3 + $0x5a8] sm:$0xff]  ;;  %v2314_v58 = vld [vmem:[%s4108_s3 + $0x5a0] sm:$0xff] }
 0x26f   : > { %v758_v61 = vpop.f32.mrf.mxu1 }
 0x270   : > { %2224 = vmatpush.msk.msra.mxu0 %vm351_vm4, %v758_v61  ;;  %v2311_v61 = vld [vmem:[%s4108_s3 + $0x588] sm:$0xff] }
 0x271   : > { %2225 = vmatmul.msk.f32.vlgmr.msra.gmra.mxu0 %vm347_vm5, %v2223_v60  ;;  %v2312_v60 = vld [vmem:[%s4108_s3 + $0x590] sm:$0xff] }
 0x272   : > { %2245 = vmatpush.msk.msrb.mxu0 %vm351_vm4, %v827_v62  ;;  %v2310_v62 = vld [vmem:[%s4108_s3 + $0x580] sm:$0xff] }
 0x274   : > { %2266 = vmatpush.msk.msra.mxu0 %vm351_vm4, %v896_v63 }
 0x279   : > { %2246 = vmatmul.msk.f32.vlgmr.msrb.gmra.mxu0 %vm347_vm5, %v2244_v0 }
 0x27a   : > { %2284 = vmatpush.msk.msrb.mxu0 %vm322_vm0, %v2283_v1  ;;  %v2328_v1 = vld [vmem:[%s4109_s4 + $0x2c] sm:$0xf] }
 0x27c   : > { %949 = vmatpush.msrb.mxu0 %v2282_v2 }
 0x27e   : > { %950 = vmatpush.msrb.mxu0 %v2281_v3  ;;  %v2346_v3 = vld [vmem:[%s4108_s3 + $0x678] sm:$0x1] }
 0x280   : > { %951 = vmatpush.msrb.mxu0 %v2280_v4  ;;  %v2345_v4 = vld [vmem:[%s4108_s3 + $0x670] sm:$0xff] }
 0x281   : > { %2267 = vmatmul.msk.f32.vlgmr.msra.gmra.mxu0 %vm347_vm5, %v2265_v5  ;;  %v2344_v5 = vld [vmem:[%s4108_s3 + $0x668] sm:$0xff] }
 0x282   : > { %952 = vmatpush.msrb.mxu0 %v2279_v6  ;;  %v2343_v6 = vld [vmem:[%s4108_s3 + $0x660] sm:$0xff] }
 0x284   : > { %953 = vmatpush.msrb.mxu0 %v2278_v7  ;;  %v2342_v7 = vld [vmem:[%s4108_s3 + $0x658] sm:$0xff] }
 0x286   : > { %954 = vmatpush.msrb.mxu0 %v2277_v8  ;;  %v2341_v8 = vld [vmem:[%s4108_s3 + $0x650] sm:$0xff] }
 0x288   : > { %955 = vmatpush.msrb.mxu0 %v2276_v9  ;;  %v2340_v9 = vld [vmem:[%s4108_s3 + $0x648] sm:$0xff] }
 0x28a   : > { %956 = vmatpush.msrb.mxu0 %v2275_v10  ;;  %v2339_v10 = vld [vmem:[%s4108_s3 + $0x640] sm:$0xff] }
 0x28c   : > { %957 = vmatpush.msrb.mxu0 %v2274_v11  ;;  %v2338_v11 = vld [vmem:[%s4108_s3 + $0x638] sm:$0xff] }
 0x28e   : > { %958 = vmatpush.msrb.mxu0 %v2273_v12  ;;  %v2337_v12 = vld [vmem:[%s4108_s3 + $0x630] sm:$0xff] }
 0x290   : > { %959 = vmatpush.msrb.mxu0 %v2272_v13  ;;  %v2336_v13 = vld [vmem:[%s4108_s3 + $0x628] sm:$0xff] }
 0x292   : > { %960 = vmatpush.msrb.mxu0 %v2271_v14  ;;  %v2335_v14 = vld [vmem:[%s4108_s3 + $0x620] sm:$0xff] }
 0x294   : > { %961 = vmatpush.msrb.mxu0 %v2270_v15  ;;  %v2334_v15 = vld [vmem:[%s4108_s3 + $0x618] sm:$0xff] }
 0x296   : > { %962 = vmatpush.msrb.mxu0 %v2269_v16  ;;  %v2333_v16 = vld [vmem:[%s4108_s3 + $0x610] sm:$0xff] }
 0x298   : > { %963 = vmatpush.msrb.mxu0 %v2268_v17  ;;  %v2332_v17 = vld [vmem:[%s4108_s3 + $0x608] sm:$0xff] }
 0x299   : > { %2285 = vmatmul.msk.f32.vlgmr.msrb.gmra.mxu0 %vm318_vm3, %v2941_v33 }
 0x2ee   : > { %v786_v18 = vpop.f32.mrf.mxu0 }
 0x2ef   : > { %v789_v19 = vadd.f32 %v786_v18, %v720_v59  ;;  %v2313_v59 = vld [vmem:[%s4108_s3 + $0x598] sm:$0xff]  ;;  %v2331_v18 = vld [vmem:[%s4108_s3 + $0x600] sm:$0xff] }
 0x2f6   : > { %v855_v20 = vpop.f32.mrf.mxu0 }
 0x2f7   : > { %v858_v21 = vadd.f32 %v855_v20, %v789_v19 }
 0x2fe   : > { %v924_v22 = vpop.f32.mrf.mxu0 }
 0x2ff   : > { %v927_v23 = vadd.f32 %v924_v22, %v858_v21  ;;  %v2349_v21 = vld [vmem:[%s4109_s4 + $0x30] sm:$0xf] }
 0x316   : > { %v965_v25 = vpop.f32.mrf.mxu0 }
 0x317   : > { %2287 = vmatpush.msk.msra.mxu1 %vm351_vm4, %v965_v25  ;;  %v2365_v25 = vld [vmem:[%s4108_s3 + $0x6e8] sm:$0xff] }
 0x318   : > { %2288 = vmatmul.msk.f32.vlgmr.msra.gmra.mxu1 %vm347_vm5, %v2286_v24  ;;  %v2366_v24 = vld [vmem:[%s4108_s3 + $0x6f0] sm:$0xff] }
 0x319   : > { %2305 = vmatpush.msk.msrb.mxu1 %vm322_vm0, %v2304_v26  ;;  %v2364_v26 = vld [vmem:[%s4108_s3 + $0x6e0] sm:$0xff] }
 0x31b   : > { %1018 = vmatpush.msrb.mxu1 %v2303_v27  ;;  %v2363_v27 = vld [vmem:[%s4108_s3 + $0x6d8] sm:$0xff] }
 0x31d   : > { %1019 = vmatpush.msrb.mxu1 %v2302_v28  ;;  %v2362_v28 = vld [vmem:[%s4108_s3 + $0x6d0] sm:$0xff] }
 0x31f   : > { %1020 = vmatpush.msrb.mxu1 %v2301_v29  ;;  %v2361_v29 = vld [vmem:[%s4108_s3 + $0x6c8] sm:$0xff] }
 0x321   : > { %1021 = vmatpush.msrb.mxu1 %v2300_v30  ;;  %v2360_v30 = vld [vmem:[%s4108_s3 + $0x6c0] sm:$0xff] }
 0x323   : > { %1022 = vmatpush.msrb.mxu1 %v2299_v31  ;;  %v2359_v31 = vld [vmem:[%s4108_s3 + $0x6b8] sm:$0xff] }
 0x325   : > { %1023 = vmatpush.msrb.mxu1 %v2298_v32  ;;  %v2358_v32 = vld [vmem:[%s4108_s3 + $0x6b0] sm:$0xff] }
 0x327   : > { %1024 = vmatpush.msrb.mxu1 %v2297_v34  ;;  %v2357_v34 = vld [vmem:[%s4108_s3 + $0x6a8] sm:$0xff] }
 0x329   : > { %1025 = vmatpush.msrb.mxu1 %v2296_v35  ;;  %v2356_v35 = vld [vmem:[%s4108_s3 + $0x6a0] sm:$0xff] }
 0x32b   : > { %1026 = vmatpush.msrb.mxu1 %v2295_v36  ;;  %v2355_v36 = vld [vmem:[%s4108_s3 + $0x698] sm:$0xff] }
 0x32d   : > { %1027 = vmatpush.msrb.mxu1 %v2294_v37  ;;  %v2354_v37 = vld [vmem:[%s4108_s3 + $0x690] sm:$0xff] }
 0x32f   : > { %1028 = vmatpush.msrb.mxu1 %v2293_v38  ;;  %v2353_v38 = vld [vmem:[%s4108_s3 + $0x688] sm:$0xff] }
 0x331   : > { %1029 = vmatpush.msrb.mxu1 %v2292_v39  ;;  %v2352_v39 = vld [vmem:[%s4108_s3 + $0x680] sm:$0xff] }
 0x333   : > { %1030 = vmatpush.msrb.mxu1 %v2291_v40 }
 0x335   : > { %1031 = vmatpush.msrb.mxu1 %v2290_v41 }
 0x337   : > { %1032 = vmatpush.msrb.mxu1 %v2289_v42  ;;  %v2370_v42 = vld [vmem:[%s4109_s4 + $0x34] sm:$0xf] }
 0x338   : > { %2306 = vmatmul.msk.f32.vlgmr.msrb.gmra.mxu1 %vm318_vm3, %v2941_v33 }
 0x395   : > { %v993_v43 = vpop.f32.mrf.mxu1 }
 0x396   : > { %v996_v44 = vadd.f32 %v993_v43, %v927_v23  ;;  %v2367_v23 = vld [vmem:[%s4108_s3 + $0x6f8] sm:$0x1] }
 0x3b5   : > { %v1034_v46 = vpop.f32.mrf.mxu1 }
 0x3b6   : > { %2308 = vmatpush.msk.msrb.mxu3 %vm351_vm4, %v1034_v46  ;;  %v2386_v46 = vld [vmem:[%s4108_s3 + $0x768] sm:$0xff] }
 0x3b7   : > { %2309 = vmatmul.msk.f32.vlgmr.msrb.gmra.mxu3 %vm347_vm5, %v2307_v45  ;;  %v2387_v45 = vld [vmem:[%s4108_s3 + $0x770] sm:$0xff] }
 0x3b8   : > { %2326 = vmatpush.msk.msra.mxu3 %vm322_vm0, %v2325_v47  ;;  %v2385_v47 = vld [vmem:[%s4108_s3 + $0x760] sm:$0xff] }
 0x3ba   : > { %1087 = vmatpush.msra.mxu3 %v2324_v48  ;;  %v2384_v48 = vld [vmem:[%s4108_s3 + $0x758] sm:$0xff] }
 0x3bc   : > { %1088 = vmatpush.msra.mxu3 %v2323_v49  ;;  %v2383_v49 = vld [vmem:[%s4108_s3 + $0x750] sm:$0xff] }
 0x3be   : > { %1089 = vmatpush.msra.mxu3 %v2322_v50  ;;  %v2382_v50 = vld [vmem:[%s4108_s3 + $0x748] sm:$0xff] }
 0x3c0   : > { %1090 = vmatpush.msra.mxu3 %v2321_v51  ;;  %v2381_v51 = vld [vmem:[%s4108_s3 + $0x740] sm:$0xff] }
 0x3c2   : > { %1091 = vmatpush.msra.mxu3 %v2320_v52  ;;  %v2380_v52 = vld [vmem:[%s4108_s3 + $0x738] sm:$0xff] }
 0x3c4   : > { %1092 = vmatpush.msra.mxu3 %v2319_v53  ;;  %v2379_v53 = vld [vmem:[%s4108_s3 + $0x730] sm:$0xff] }
 0x3c6   : > { %1093 = vmatpush.msra.mxu3 %v2318_v54  ;;  %v2378_v54 = vld [vmem:[%s4108_s3 + $0x728] sm:$0xff] }
 0x3c8   : > { %1094 = vmatpush.msra.mxu3 %v2317_v55  ;;  %v2377_v55 = vld [vmem:[%s4108_s3 + $0x720] sm:$0xff] }
 0x3ca   : > { %1095 = vmatpush.msra.mxu3 %v2316_v56  ;;  %v2376_v56 = vld [vmem:[%s4108_s3 + $0x718] sm:$0xff] }
 0x3cc   : > { %1096 = vmatpush.msra.mxu3 %v2315_v57  ;;  %v2375_v57 = vld [vmem:[%s4108_s3 + $0x710] sm:$0xff] }
 0x3ce   : > { %1097 = vmatpush.msra.mxu3 %v2314_v58  ;;  %v2374_v58 = vld [vmem:[%s4108_s3 + $0x708] sm:$0xff] }
 0x3d0   : > { %1098 = vmatpush.msra.mxu3 %v2313_v59  ;;  %v2373_v59 = vld [vmem:[%s4108_s3 + $0x700] sm:$0xff] }
 0x3d2   : > { %1099 = vmatpush.msra.mxu3 %v2312_v60 }
 0x3d4   : > { %1100 = vmatpush.msra.mxu3 %v2311_v61 }
 0x3d6   : > { %1101 = vmatpush.msra.mxu3 %v2310_v62  ;;  %v2391_v62 = vld [vmem:[%s4109_s4 + $0x38] sm:$0xf] }
 0x3d7   : > { %2327 = vmatmul.msk.f32.vlgmr.msra.gmra.mxu3 %vm318_vm3, %v2941_v33 }
 0x43a   : > { %v1062_v63 = vpop.f32.mrf.mxu3 }
 0x43b   : > { %v1065_v0 = vadd.f32 %v1062_v63, %v996_v44  ;;  %v2388_v44 = vld [vmem:[%s4108_s3 + $0x778] sm:$0x1] }
 0x45a   : > { %v1103_v2 = vpop.f32.mrf.mxu3 }
 0x45b   : > { %2329 = vmatpush.msk.msrb.mxu2 %vm351_vm4, %v1103_v2  ;;  %v2407_v2 = vld [vmem:[%s4108_s3 + $0x7e8] sm:$0xff] }
 0x45c   : > { %2330 = vmatmul.msk.f32.vlgmr.msrb.gmra.mxu2 %vm347_vm5, %v2328_v1  ;;  %v2408_v1 = vld [vmem:[%s4108_s3 + $0x7f0] sm:$0xff] }
 0x45d   : > { %2347 = vmatpush.msk.msra.mxu2 %vm322_vm0, %v2346_v3  ;;  %v2406_v3 = vld [vmem:[%s4108_s3 + $0x7e0] sm:$0xff] }
 0x45f   : > { %1156 = vmatpush.msra.mxu2 %v2345_v4  ;;  %v2405_v4 = vld [vmem:[%s4108_s3 + $0x7d8] sm:$0xff] }
 0x461   : > { %1157 = vmatpush.msra.mxu2 %v2344_v5  ;;  %v2404_v5 = vld [vmem:[%s4108_s3 + $0x7d0] sm:$0xff] }
 0x463   : > { %1158 = vmatpush.msra.mxu2 %v2343_v6  ;;  %v2403_v6 = vld [vmem:[%s4108_s3 + $0x7c8] sm:$0xff] }
 0x465   : > { %1159 = vmatpush.msra.mxu2 %v2342_v7  ;;  %v2402_v7 = vld [vmem:[%s4108_s3 + $0x7c0] sm:$0xff] }
 0x467   : > { %1160 = vmatpush.msra.mxu2 %v2341_v8  ;;  %v2401_v8 = vld [vmem:[%s4108_s3 + $0x7b8] sm:$0xff] }
 0x469   : > { %1161 = vmatpush.msra.mxu2 %v2340_v9  ;;  %v2400_v9 = vld [vmem:[%s4108_s3 + $0x7b0] sm:$0xff] }
 0x46b   : > { %1162 = vmatpush.msra.mxu2 %v2339_v10  ;;  %v2399_v10 = vld [vmem:[%s4108_s3 + $0x7a8] sm:$0xff] }
 0x46d   : > { %1163 = vmatpush.msra.mxu2 %v2338_v11  ;;  %v2398_v11 = vld [vmem:[%s4108_s3 + $0x7a0] sm:$0xff] }
 0x46f   : > { %1164 = vmatpush.msra.mxu2 %v2337_v12  ;;  %v2397_v12 = vld [vmem:[%s4108_s3 + $0x798] sm:$0xff] }
 0x471   : > { %1165 = vmatpush.msra.mxu2 %v2336_v13  ;;  %v2396_v13 = vld [vmem:[%s4108_s3 + $0x790] sm:$0xff] }
 0x473   : > { %1166 = vmatpush.msra.mxu2 %v2335_v14  ;;  %v2395_v14 = vld [vmem:[%s4108_s3 + $0x788] sm:$0xff] }
 0x475   : > { %1167 = vmatpush.msra.mxu2 %v2334_v15  ;;  %v2394_v15 = vld [vmem:[%s4108_s3 + $0x780] sm:$0xff] }
 0x477   : > { %1168 = vmatpush.msra.mxu2 %v2333_v16 }
 0x479   : > { %1169 = vmatpush.msra.mxu2 %v2332_v17 }
 0x47b   : > { %1170 = vmatpush.msra.mxu2 %v2331_v18  ;;  %v2412_v18 = vld [vmem:[%s4109_s4 + $0x3c] sm:$0xf] }
 0x47c   : > { %2348 = vmatmul.msk.f32.vlgmr.msra.gmra.mxu2 %vm318_vm3, %v2941_v33 }
 0x4df   : > { %v1131_v19 = vpop.f32.mrf.mxu2 }
 0x4e0   : > { %v1134_v20 = vadd.f32 %v1131_v19, %v1065_v0  ;;  %v2409_v0 = vld [vmem:[%s4108_s3 + $0x7f8] sm:$0x1] }
 0x4ff   : > { %v1172_v22 = vpop.f32.mrf.mxu2 }
 0x500   : > { %2350 = vmatpush.msk.msra.mxu0 %vm351_vm4, %v1172_v22  ;;  %v2428_v22 = vld [vmem:[%s4108_s3 + $0x868] sm:$0xff] }
 0x501   : > { %2351 = vmatmul.msk.f32.vlgmr.msra.gmra.mxu0 %vm347_vm5, %v2349_v21  ;;  %v2429_v21 = vld [vmem:[%s4108_s3 + $0x870] sm:$0xff] }
 0x502   : > { %2368 = vmatpush.msk.msrb.mxu0 %vm322_vm0, %v2367_v23  ;;  %v2427_v23 = vld [vmem:[%s4108_s3 + $0x860] sm:$0xff] }
 0x504   : > { %1225 = vmatpush.msrb.mxu0 %v2366_v24  ;;  %v2426_v24 = vld [vmem:[%s4108_s3 + $0x858] sm:$0xff] }
 0x506   : > { %1226 = vmatpush.msrb.mxu0 %v2365_v25  ;;  %v2425_v25 = vld [vmem:[%s4108_s3 + $0x850] sm:$0xff] }
 0x508   : > { %1227 = vmatpush.msrb.mxu0 %v2364_v26  ;;  %v2424_v26 = vld [vmem:[%s4108_s3 + $0x848] sm:$0xff] }
 0x50a   : > { %1228 = vmatpush.msrb.mxu0 %v2363_v27  ;;  %v2423_v27 = vld [vmem:[%s4108_s3 + $0x840] sm:$0xff] }
 0x50c   : > { %1229 = vmatpush.msrb.mxu0 %v2362_v28  ;;  %v2422_v28 = vld [vmem:[%s4108_s3 + $0x838] sm:$0xff] }
 0x50e   : > { %1230 = vmatpush.msrb.mxu0 %v2361_v29  ;;  %v2421_v29 = vld [vmem:[%s4108_s3 + $0x830] sm:$0xff] }
 0x510   : > { %1231 = vmatpush.msrb.mxu0 %v2360_v30  ;;  %v2420_v30 = vld [vmem:[%s4108_s3 + $0x828] sm:$0xff] }
 0x512   : > { %1232 = vmatpush.msrb.mxu0 %v2359_v31  ;;  %v2419_v31 = vld [vmem:[%s4108_s3 + $0x820] sm:$0xff] }
 0x514   : > { %1233 = vmatpush.msrb.mxu0 %v2358_v32  ;;  %v2418_v32 = vld [vmem:[%s4108_s3 + $0x818] sm:$0xff] }
 0x516   : > { %1234 = vmatpush.msrb.mxu0 %v2357_v34  ;;  %v2417_v34 = vld [vmem:[%s4108_s3 + $0x810] sm:$0xff] }
 0x518   : > { %1235 = vmatpush.msrb.mxu0 %v2356_v35  ;;  %v2416_v35 = vld [vmem:[%s4108_s3 + $0x808] sm:$0xff] }
 0x51a   : > { %1236 = vmatpush.msrb.mxu0 %v2355_v36  ;;  %v2415_v36 = vld [vmem:[%s4108_s3 + $0x800] sm:$0xff] }
 0x51c   : > { %1237 = vmatpush.msrb.mxu0 %v2354_v37 }
 0x51e   : > { %1238 = vmatpush.msrb.mxu0 %v2353_v38 }
 0x520   : > { %1239 = vmatpush.msrb.mxu0 %v2352_v39  ;;  %v2433_v39 = vld [vmem:[%s4109_s4 + $0x40] sm:$0xf] }
 0x521   : > { %2369 = vmatmul.msk.f32.vlgmr.msrb.gmra.mxu0 %vm318_vm3, %v2941_v33 }
 0x57e   : > { %v1200_v40 = vpop.f32.mrf.mxu0 }
 0x57f   : > { %v1203_v41 = vadd.f32 %v1200_v40, %v1134_v20  ;;  %v2430_v20 = vld [vmem:[%s4108_s3 + $0x878] sm:$0x1] }
 0x59e   : > { %v1241_v43 = vpop.f32.mrf.mxu0 }
 0x59f   : > { %2371 = vmatpush.msk.msra.mxu1 %vm351_vm4, %v1241_v43  ;;  %v2449_v43 = vld [vmem:[%s4108_s3 + $0x8e8] sm:$0xff] }
 0x5a0   : > { %2372 = vmatmul.msk.f32.vlgmr.msra.gmra.mxu1 %vm347_vm5, %v2370_v42  ;;  %v2450_v42 = vld [vmem:[%s4108_s3 + $0x8f0] sm:$0xff] }
 0x5a1   : > { %2389 = vmatpush.msk.msrb.mxu1 %vm322_vm0, %v2388_v44  ;;  %v2448_v44 = vld [vmem:[%s4108_s3 + $0x8e0] sm:$0xff] }
 0x5a3   : > { %1294 = vmatpush.msrb.mxu1 %v2387_v45  ;;  %v2447_v45 = vld [vmem:[%s4108_s3 + $0x8d8] sm:$0xff] }
 0x5a5   : > { %1295 = vmatpush.msrb.mxu1 %v2386_v46  ;;  %v2446_v46 = vld [vmem:[%s4108_s3 + $0x8d0] sm:$0xff] }
 0x5a7   : > { %1296 = vmatpush.msrb.mxu1 %v2385_v47  ;;  %v2445_v47 = vld [vmem:[%s4108_s3 + $0x8c8] sm:$0xff] }
 0x5a9   : > { %1297 = vmatpush.msrb.mxu1 %v2384_v48  ;;  %v2444_v48 = vld [vmem:[%s4108_s3 + $0x8c0] sm:$0xff] }
 0x5ab   : > { %1298 = vmatpush.msrb.mxu1 %v2383_v49  ;;  %v2443_v49 = vld [vmem:[%s4108_s3 + $0x8b8] sm:$0xff] }
 0x5ad   : > { %1299 = vmatpush.msrb.mxu1 %v2382_v50  ;;  %v2442_v50 = vld [vmem:[%s4108_s3 + $0x8b0] sm:$0xff] }
 0x5af   : > { %1300 = vmatpush.msrb.mxu1 %v2381_v51  ;;  %v2441_v51 = vld [vmem:[%s4108_s3 + $0x8a8] sm:$0xff] }
 0x5b1   : > { %1301 = vmatpush.msrb.mxu1 %v2380_v52  ;;  %v2440_v52 = vld [vmem:[%s4108_s3 + $0x8a0] sm:$0xff] }
 0x5b3   : > { %1302 = vmatpush.msrb.mxu1 %v2379_v53  ;;  %v2439_v53 = vld [vmem:[%s4108_s3 + $0x898] sm:$0xff] }
 0x5b5   : > { %1303 = vmatpush.msrb.mxu1 %v2378_v54  ;;  %v2438_v54 = vld [vmem:[%s4108_s3 + $0x890] sm:$0xff] }
 0x5b7   : > { %1304 = vmatpush.msrb.mxu1 %v2377_v55  ;;  %v2437_v55 = vld [vmem:[%s4108_s3 + $0x888] sm:$0xff] }
 0x5b9   : > { %1305 = vmatpush.msrb.mxu1 %v2376_v56  ;;  %v2436_v56 = vld [vmem:[%s4108_s3 + $0x880] sm:$0xff] }
 0x5bb   : > { %1306 = vmatpush.msrb.mxu1 %v2375_v57 }
 0x5bd   : > { %1307 = vmatpush.msrb.mxu1 %v2374_v58 }
 0x5bf   : > { %1308 = vmatpush.msrb.mxu1 %v2373_v59  ;;  %v2454_v59 = vld [vmem:[%s4109_s4 + $0x44] sm:$0xf] }
 0x5c0   : > { %2390 = vmatmul.msk.f32.vlgmr.msrb.gmra.mxu1 %vm318_vm3, %v2941_v33 }
 0x61d   : > { %v1269_v60 = vpop.f32.mrf.mxu1 }
 0x61e   : > { %v1272_v61 = vadd.f32 %v1269_v60, %v1203_v41  ;;  %v2451_v41 = vld [vmem:[%s4108_s3 + $0x8f8] sm:$0x1] }
 0x63d   : > { %v1310_v63 = vpop.f32.mrf.mxu1 }
 0x63e   : > { %2392 = vmatpush.msk.msrb.mxu3 %vm351_vm4, %v1310_v63  ;;  %v2470_v63 = vld [vmem:[%s4108_s3 + $0x968] sm:$0xff] }
 0x63f   : > { %2393 = vmatmul.msk.f32.vlgmr.msrb.gmra.mxu3 %vm347_vm5, %v2391_v62  ;;  %v2471_v62 = vld [vmem:[%s4108_s3 + $0x970] sm:$0xff] }
 0x640   : > { %2410 = vmatpush.msk.msra.mxu3 %vm322_vm0, %v2409_v0  ;;  %v2469_v0 = vld [vmem:[%s4108_s3 + $0x960] sm:$0xff] }
 0x642   : > { %1363 = vmatpush.msra.mxu3 %v2408_v1  ;;  %v2468_v1 = vld [vmem:[%s4108_s3 + $0x958] sm:$0xff] }
 0x644   : > { %1364 = vmatpush.msra.mxu3 %v2407_v2  ;;  %v2467_v2 = vld [vmem:[%s4108_s3 + $0x950] sm:$0xff] }
 0x646   : > { %1365 = vmatpush.msra.mxu3 %v2406_v3  ;;  %v2466_v3 = vld [vmem:[%s4108_s3 + $0x948] sm:$0xff] }
 0x648   : > { %1366 = vmatpush.msra.mxu3 %v2405_v4  ;;  %v2465_v4 = vld [vmem:[%s4108_s3 + $0x940] sm:$0xff] }
 0x64a   : > { %1367 = vmatpush.msra.mxu3 %v2404_v5  ;;  %v2464_v5 = vld [vmem:[%s4108_s3 + $0x938] sm:$0xff] }
 0x64c   : > { %1368 = vmatpush.msra.mxu3 %v2403_v6  ;;  %v2463_v6 = vld [vmem:[%s4108_s3 + $0x930] sm:$0xff] }
 0x64e   : > { %1369 = vmatpush.msra.mxu3 %v2402_v7  ;;  %v2462_v7 = vld [vmem:[%s4108_s3 + $0x928] sm:$0xff] }
 0x650   : > { %1370 = vmatpush.msra.mxu3 %v2401_v8  ;;  %v2461_v8 = vld [vmem:[%s4108_s3 + $0x920] sm:$0xff] }
 0x652   : > { %1371 = vmatpush.msra.mxu3 %v2400_v9  ;;  %v2460_v9 = vld [vmem:[%s4108_s3 + $0x918] sm:$0xff] }
 0x654   : > { %1372 = vmatpush.msra.mxu3 %v2399_v10  ;;  %v2459_v10 = vld [vmem:[%s4108_s3 + $0x910] sm:$0xff] }
 0x656   : > { %1373 = vmatpush.msra.mxu3 %v2398_v11  ;;  %v2458_v11 = vld [vmem:[%s4108_s3 + $0x908] sm:$0xff] }
 0x658   : > { %1374 = vmatpush.msra.mxu3 %v2397_v12  ;;  %v2457_v12 = vld [vmem:[%s4108_s3 + $0x900] sm:$0xff] }
 0x65a   : > { %1375 = vmatpush.msra.mxu3 %v2396_v13 }
 0x65c   : > { %1376 = vmatpush.msra.mxu3 %v2395_v14 }
 0x65e   : > { %1377 = vmatpush.msra.mxu3 %v2394_v15  ;;  %v2475_v15 = vld [vmem:[%s4109_s4 + $0x48] sm:$0xf] }
 0x65f   : > { %2411 = vmatmul.msk.f32.vlgmr.msra.gmra.mxu3 %vm318_vm3, %v2941_v33 }
 0x6c2   : > { %v1338_v16 = vpop.f32.mrf.mxu3 }
 0x6c3   : > { %v1341_v17 = vadd.f32 %v1338_v16, %v1272_v61  ;;  %v2472_v61 = vld [vmem:[%s4108_s3 + $0x978] sm:$0x1] }
 0x6e2   : > { %v1379_v19 = vpop.f32.mrf.mxu3 }
 0x6e3   : > { %2413 = vmatpush.msk.msrb.mxu2 %vm351_vm4, %v1379_v19  ;;  %v2491_v19 = vld [vmem:[%s4108_s3 + $0x9e8] sm:$0xff] }
 0x6e4   : > { %2414 = vmatmul.msk.f32.vlgmr.msrb.gmra.mxu2 %vm347_vm5, %v2412_v18  ;;  %v2492_v18 = vld [vmem:[%s4108_s3 + $0x9f0] sm:$0xff] }
 0x6e5   : > { %2431 = vmatpush.msk.msra.mxu2 %vm322_vm0, %v2430_v20  ;;  %v2490_v20 = vld [vmem:[%s4108_s3 + $0x9e0] sm:$0xff] }
 0x6e7   : > { %1432 = vmatpush.msra.mxu2 %v2429_v21  ;;  %v2489_v21 = vld [vmem:[%s4108_s3 + $0x9d8] sm:$0xff] }
 0x6e9   : > { %1433 = vmatpush.msra.mxu2 %v2428_v22  ;;  %v2488_v22 = vld [vmem:[%s4108_s3 + $0x9d0] sm:$0xff] }
 0x6eb   : > { %1434 = vmatpush.msra.mxu2 %v2427_v23  ;;  %v2487_v23 = vld [vmem:[%s4108_s3 + $0x9c8] sm:$0xff] }
 0x6ed   : > { %1435 = vmatpush.msra.mxu2 %v2426_v24  ;;  %v2486_v24 = vld [vmem:[%s4108_s3 + $0x9c0] sm:$0xff] }
 0x6ef   : > { %1436 = vmatpush.msra.mxu2 %v2425_v25  ;;  %v2485_v25 = vld [vmem:[%s4108_s3 + $0x9b8] sm:$0xff] }
 0x6f1   : > { %1437 = vmatpush.msra.mxu2 %v2424_v26  ;;  %v2484_v26 = vld [vmem:[%s4108_s3 + $0x9b0] sm:$0xff] }
 0x6f3   : > { %1438 = vmatpush.msra.mxu2 %v2423_v27  ;;  %v2483_v27 = vld [vmem:[%s4108_s3 + $0x9a8] sm:$0xff] }
 0x6f5   : > { %1439 = vmatpush.msra.mxu2 %v2422_v28  ;;  %v2482_v28 = vld [vmem:[%s4108_s3 + $0x9a0] sm:$0xff] }
 0x6f7   : > { %1440 = vmatpush.msra.mxu2 %v2421_v29  ;;  %v2481_v29 = vld [vmem:[%s4108_s3 + $0x998] sm:$0xff] }
 0x6f9   : > { %1441 = vmatpush.msra.mxu2 %v2420_v30  ;;  %v2480_v30 = vld [vmem:[%s4108_s3 + $0x990] sm:$0xff] }
 0x6fb   : > { %1442 = vmatpush.msra.mxu2 %v2419_v31  ;;  %v2479_v31 = vld [vmem:[%s4108_s3 + $0x988] sm:$0xff] }
 0x6fd   : > { %1443 = vmatpush.msra.mxu2 %v2418_v32  ;;  %v2478_v32 = vld [vmem:[%s4108_s3 + $0x980] sm:$0xff] }
 0x6ff   : > { %1444 = vmatpush.msra.mxu2 %v2417_v34 }
 0x701   : > { %1445 = vmatpush.msra.mxu2 %v2416_v35 }
 0x703   : > { %1446 = vmatpush.msra.mxu2 %v2415_v36  ;;  %v2496_v36 = vld [vmem:[%s4109_s4 + $0x4c] sm:$0xf] }
 0x704   : > { %2432 = vmatmul.msk.f32.vlgmr.msra.gmra.mxu2 %vm318_vm3, %v2941_v33 }
 0x767   : > { %v1407_v37 = vpop.f32.mrf.mxu2 }
 0x768   : > { %v1410_v38 = vadd.f32 %v1407_v37, %v1341_v17  ;;  %v2493_v17 = vld [vmem:[%s4108_s3 + $0x9f8] sm:$0x1] }
 0x787   : > { %v1448_v40 = vpop.f32.mrf.mxu2 }
 0x788   : > { %2434 = vmatpush.msk.msra.mxu0 %vm351_vm4, %v1448_v40  ;;  %v2512_v40 = vld [vmem:[%s4108_s3 + $0xa68] sm:$0xff] }
 0x789   : > { %2435 = vmatmul.msk.f32.vlgmr.msra.gmra.mxu0 %vm347_vm5, %v2433_v39  ;;  %v2513_v39 = vld [vmem:[%s4108_s3 + $0xa70] sm:$0xff] }
 0x78a   : > { %2452 = vmatpush.msk.msrb.mxu0 %vm322_vm0, %v2451_v41  ;;  %v2511_v41 = vld [vmem:[%s4108_s3 + $0xa60] sm:$0xff] }
 0x78c   : > { %1501 = vmatpush.msrb.mxu0 %v2450_v42  ;;  %v2510_v42 = vld [vmem:[%s4108_s3 + $0xa58] sm:$0xff] }
 0x78e   : > { %1502 = vmatpush.msrb.mxu0 %v2449_v43  ;;  %v2509_v43 = vld [vmem:[%s4108_s3 + $0xa50] sm:$0xff] }
 0x790   : > { %1503 = vmatpush.msrb.mxu0 %v2448_v44  ;;  %v2508_v44 = vld [vmem:[%s4108_s3 + $0xa48] sm:$0xff] }
 0x792   : > { %1504 = vmatpush.msrb.mxu0 %v2447_v45  ;;  %v2507_v45 = vld [vmem:[%s4108_s3 + $0xa40] sm:$0xff] }
 0x794   : > { %1505 = vmatpush.msrb.mxu0 %v2446_v46  ;;  %v2506_v46 = vld [vmem:[%s4108_s3 + $0xa38] sm:$0xff] }
 0x796   : > { %1506 = vmatpush.msrb.mxu0 %v2445_v47  ;;  %v2505_v47 = vld [vmem:[%s4108_s3 + $0xa30] sm:$0xff] }
 0x798   : > { %1507 = vmatpush.msrb.mxu0 %v2444_v48  ;;  %v2504_v48 = vld [vmem:[%s4108_s3 + $0xa28] sm:$0xff] }
 0x79a   : > { %1508 = vmatpush.msrb.mxu0 %v2443_v49  ;;  %v2503_v49 = vld [vmem:[%s4108_s3 + $0xa20] sm:$0xff] }
 0x79c   : > { %1509 = vmatpush.msrb.mxu0 %v2442_v50  ;;  %v2502_v50 = vld [vmem:[%s4108_s3 + $0xa18] sm:$0xff] }
 0x79e   : > { %1510 = vmatpush.msrb.mxu0 %v2441_v51  ;;  %v2501_v51 = vld [vmem:[%s4108_s3 + $0xa10] sm:$0xff] }
 0x7a0   : > { %1511 = vmatpush.msrb.mxu0 %v2440_v52  ;;  %v2500_v52 = vld [vmem:[%s4108_s3 + $0xa08] sm:$0xff] }
 0x7a2   : > { %1512 = vmatpush.msrb.mxu0 %v2439_v53  ;;  %v2499_v53 = vld [vmem:[%s4108_s3 + $0xa00] sm:$0xff] }
 0x7a4   : > { %1513 = vmatpush.msrb.mxu0 %v2438_v54 }
 0x7a6   : > { %1514 = vmatpush.msrb.mxu0 %v2437_v55 }
 0x7a8   : > { %1515 = vmatpush.msrb.mxu0 %v2436_v56  ;;  %v2517_v56 = vld [vmem:[%s4109_s4 + $0x50] sm:$0xf] }
 0x7a9   : > { %2453 = vmatmul.msk.f32.vlgmr.msrb.gmra.mxu0 %vm318_vm3, %v2941_v33 }
 0x806   : > { %v1476_v57 = vpop.f32.mrf.mxu0 }
 0x807   : > { %v1479_v58 = vadd.f32 %v1476_v57, %v1410_v38  ;;  %v2514_v38 = vld [vmem:[%s4108_s3 + $0xa78] sm:$0x1] }
 0x826   : > { %v1517_v60 = vpop.f32.mrf.mxu0 }
 0x827   : > { %2455 = vmatpush.msk.msra.mxu1 %vm351_vm4, %v1517_v60  ;;  %v2533_v60 = vld [vmem:[%s4108_s3 + $0xae8] sm:$0xff] }
 0x828   : > { %2456 = vmatmul.msk.f32.vlgmr.msra.gmra.mxu1 %vm347_vm5, %v2454_v59  ;;  %v2534_v59 = vld [vmem:[%s4108_s3 + $0xaf0] sm:$0xff] }
 0x829   : > { %2473 = vmatpush.msk.msrb.mxu1 %vm322_vm0, %v2472_v61  ;;  %v2532_v61 = vld [vmem:[%s4108_s3 + $0xae0] sm:$0xff] }
 0x82b   : > { %1570 = vmatpush.msrb.mxu1 %v2471_v62  ;;  %v2531_v62 = vld [vmem:[%s4108_s3 + $0xad8] sm:$0xff] }
 0x82d   : > { %1571 = vmatpush.msrb.mxu1 %v2470_v63  ;;  %v2530_v63 = vld [vmem:[%s4108_s3 + $0xad0] sm:$0xff] }
 0x82f   : > { %1572 = vmatpush.msrb.mxu1 %v2469_v0  ;;  %v2529_v0 = vld [vmem:[%s4108_s3 + $0xac8] sm:$0xff] }
 0x831   : > { %1573 = vmatpush.msrb.mxu1 %v2468_v1  ;;  %v2528_v1 = vld [vmem:[%s4108_s3 + $0xac0] sm:$0xff] }
 0x833   : > { %1574 = vmatpush.msrb.mxu1 %v2467_v2  ;;  %v2527_v2 = vld [vmem:[%s4108_s3 + $0xab8] sm:$0xff] }
 0x835   : > { %1575 = vmatpush.msrb.mxu1 %v2466_v3  ;;  %v2526_v3 = vld [vmem:[%s4108_s3 + $0xab0] sm:$0xff] }
 0x837   : > { %1576 = vmatpush.msrb.mxu1 %v2465_v4  ;;  %v2525_v4 = vld [vmem:[%s4108_s3 + $0xaa8] sm:$0xff] }
 0x839   : > { %1577 = vmatpush.msrb.mxu1 %v2464_v5  ;;  %v2524_v5 = vld [vmem:[%s4108_s3 + $0xaa0] sm:$0xff] }
 0x83b   : > { %1578 = vmatpush.msrb.mxu1 %v2463_v6  ;;  %v2523_v6 = vld [vmem:[%s4108_s3 + $0xa98] sm:$0xff] }
 0x83d   : > { %1579 = vmatpush.msrb.mxu1 %v2462_v7  ;;  %v2522_v7 = vld [vmem:[%s4108_s3 + $0xa90] sm:$0xff] }
 0x83f   : > { %1580 = vmatpush.msrb.mxu1 %v2461_v8  ;;  %v2521_v8 = vld [vmem:[%s4108_s3 + $0xa88] sm:$0xff] }
 0x841   : > { %1581 = vmatpush.msrb.mxu1 %v2460_v9  ;;  %v2520_v9 = vld [vmem:[%s4108_s3 + $0xa80] sm:$0xff] }
 0x843   : > { %1582 = vmatpush.msrb.mxu1 %v2459_v10 }
 0x845   : > { %1583 = vmatpush.msrb.mxu1 %v2458_v11 }
 0x847   : > { %1584 = vmatpush.msrb.mxu1 %v2457_v12  ;;  %v2538_v12 = vld [vmem:[%s4109_s4 + $0x54] sm:$0xf] }
 0x848   : > { %2474 = vmatmul.msk.f32.vlgmr.msrb.gmra.mxu1 %vm318_vm3, %v2941_v33 }
 0x8a5   : > { %v1545_v13 = vpop.f32.mrf.mxu1 }
 0x8a6   : > { %v1548_v14 = vadd.f32 %v1545_v13, %v1479_v58  ;;  %v2535_v58 = vld [vmem:[%s4108_s3 + $0xaf8] sm:$0x1] }
 0x8c5   : > { %v1586_v16 = vpop.f32.mrf.mxu1 }
 0x8c6   : > { %2476 = vmatpush.msk.msrb.mxu3 %vm351_vm4, %v1586_v16  ;;  %v2554_v16 = vld [vmem:[%s4108_s3 + $0xb68] sm:$0xff] }
 0x8c7   : > { %2477 = vmatmul.msk.f32.vlgmr.msrb.gmra.mxu3 %vm347_vm5, %v2475_v15  ;;  %v2555_v15 = vld [vmem:[%s4108_s3 + $0xb70] sm:$0xff] }
 0x8c8   : > { %2494 = vmatpush.msk.msra.mxu3 %vm322_vm0, %v2493_v17  ;;  %v2553_v17 = vld [vmem:[%s4108_s3 + $0xb60] sm:$0xff] }
 0x8ca   : > { %1639 = vmatpush.msra.mxu3 %v2492_v18  ;;  %v2552_v18 = vld [vmem:[%s4108_s3 + $0xb58] sm:$0xff] }
 0x8cc   : > { %1640 = vmatpush.msra.mxu3 %v2491_v19  ;;  %v2551_v19 = vld [vmem:[%s4108_s3 + $0xb50] sm:$0xff] }
 0x8ce   : > { %1641 = vmatpush.msra.mxu3 %v2490_v20  ;;  %v2550_v20 = vld [vmem:[%s4108_s3 + $0xb48] sm:$0xff] }
 0x8d0   : > { %1642 = vmatpush.msra.mxu3 %v2489_v21  ;;  %v2549_v21 = vld [vmem:[%s4108_s3 + $0xb40] sm:$0xff] }
 0x8d2   : > { %1643 = vmatpush.msra.mxu3 %v2488_v22  ;;  %v2548_v22 = vld [vmem:[%s4108_s3 + $0xb38] sm:$0xff] }
 0x8d4   : > { %1644 = vmatpush.msra.mxu3 %v2487_v23  ;;  %v2547_v23 = vld [vmem:[%s4108_s3 + $0xb30] sm:$0xff] }
 0x8d6   : > { %1645 = vmatpush.msra.mxu3 %v2486_v24  ;;  %v2546_v24 = vld [vmem:[%s4108_s3 + $0xb28] sm:$0xff] }
 0x8d8   : > { %1646 = vmatpush.msra.mxu3 %v2485_v25  ;;  %v2545_v25 = vld [vmem:[%s4108_s3 + $0xb20] sm:$0xff] }
 0x8da   : > { %1647 = vmatpush.msra.mxu3 %v2484_v26  ;;  %v2544_v26 = vld [vmem:[%s4108_s3 + $0xb18] sm:$0xff] }
 0x8dc   : > { %1648 = vmatpush.msra.mxu3 %v2483_v27  ;;  %v2543_v27 = vld [vmem:[%s4108_s3 + $0xb10] sm:$0xff] }
 0x8de   : > { %1649 = vmatpush.msra.mxu3 %v2482_v28  ;;  %v2542_v28 = vld [vmem:[%s4108_s3 + $0xb08] sm:$0xff] }
 0x8e0   : > { %1650 = vmatpush.msra.mxu3 %v2481_v29  ;;  %v2541_v29 = vld [vmem:[%s4108_s3 + $0xb00] sm:$0xff] }
 0x8e2   : > { %1651 = vmatpush.msra.mxu3 %v2480_v30 }
 0x8e4   : > { %1652 = vmatpush.msra.mxu3 %v2479_v31 }
 0x8e6   : > { %1653 = vmatpush.msra.mxu3 %v2478_v32  ;;  %v2559_v32 = vld [vmem:[%s4109_s4 + $0x58] sm:$0xf] }
 0x8e7   : > { %2495 = vmatmul.msk.f32.vlgmr.msra.gmra.mxu3 %vm318_vm3, %v2941_v33 }
 0x94a   : > { %v1614_v34 = vpop.f32.mrf.mxu3 }
 0x94b   : > { %v1617_v35 = vadd.f32 %v1614_v34, %v1548_v14  ;;  %v2556_v14 = vld [vmem:[%s4108_s3 + $0xb78] sm:$0x1] }
 0x96a   : > { %v1655_v37 = vpop.f32.mrf.mxu3 }
 0x96b   : > { %2497 = vmatpush.msk.msrb.mxu2 %vm351_vm4, %v1655_v37  ;;  %v2575_v37 = vld [vmem:[%s4108_s3 + $0xbe8] sm:$0xff] }
 0x96c   : > { %2498 = vmatmul.msk.f32.vlgmr.msrb.gmra.mxu2 %vm347_vm5, %v2496_v36  ;;  %v2576_v36 = vld [vmem:[%s4108_s3 + $0xbf0] sm:$0xff] }
 0x96d   : > { %2515 = vmatpush.msk.msra.mxu2 %vm322_vm0, %v2514_v38  ;;  %v2574_v38 = vld [vmem:[%s4108_s3 + $0xbe0] sm:$0xff] }
 0x96f   : > { %1708 = vmatpush.msra.mxu2 %v2513_v39  ;;  %v2573_v39 = vld [vmem:[%s4108_s3 + $0xbd8] sm:$0xff] }
 0x971   : > { %1709 = vmatpush.msra.mxu2 %v2512_v40  ;;  %v2572_v40 = vld [vmem:[%s4108_s3 + $0xbd0] sm:$0xff] }
 0x973   : > { %1710 = vmatpush.msra.mxu2 %v2511_v41  ;;  %v2571_v41 = vld [vmem:[%s4108_s3 + $0xbc8] sm:$0xff] }
 0x975   : > { %1711 = vmatpush.msra.mxu2 %v2510_v42  ;;  %v2570_v42 = vld [vmem:[%s4108_s3 + $0xbc0] sm:$0xff] }
 0x977   : > { %1712 = vmatpush.msra.mxu2 %v2509_v43  ;;  %v2569_v43 = vld [vmem:[%s4108_s3 + $0xbb8] sm:$0xff] }
 0x979   : > { %1713 = vmatpush.msra.mxu2 %v2508_v44  ;;  %v2568_v44 = vld [vmem:[%s4108_s3 + $0xbb0] sm:$0xff] }
 0x97b   : > { %1714 = vmatpush.msra.mxu2 %v2507_v45  ;;  %v2567_v45 = vld [vmem:[%s4108_s3 + $0xba8] sm:$0xff] }
 0x97d   : > { %1715 = vmatpush.msra.mxu2 %v2506_v46  ;;  %v2566_v46 = vld [vmem:[%s4108_s3 + $0xba0] sm:$0xff] }
 0x97f   : > { %1716 = vmatpush.msra.mxu2 %v2505_v47  ;;  %v2565_v47 = vld [vmem:[%s4108_s3 + $0xb98] sm:$0xff] }
 0x981   : > { %1717 = vmatpush.msra.mxu2 %v2504_v48  ;;  %v2564_v48 = vld [vmem:[%s4108_s3 + $0xb90] sm:$0xff] }
 0x983   : > { %1718 = vmatpush.msra.mxu2 %v2503_v49  ;;  %v2563_v49 = vld [vmem:[%s4108_s3 + $0xb88] sm:$0xff] }
 0x985   : > { %1719 = vmatpush.msra.mxu2 %v2502_v50  ;;  %v2562_v50 = vld [vmem:[%s4108_s3 + $0xb80] sm:$0xff] }
 0x987   : > { %1720 = vmatpush.msra.mxu2 %v2501_v51 }
 0x989   : > { %1721 = vmatpush.msra.mxu2 %v2500_v52 }
 0x98b   : > { %1722 = vmatpush.msra.mxu2 %v2499_v53  ;;  %v2580_v53 = vld [vmem:[%s4109_s4 + $0x5c] sm:$0xf] }
 0x98c   : > { %2516 = vmatmul.msk.f32.vlgmr.msra.gmra.mxu2 %vm318_vm3, %v2941_v33 }
 0x9ef   : > { %v1683_v54 = vpop.f32.mrf.mxu2 }
 0x9f0   : > { %v1686_v55 = vadd.f32 %v1683_v54, %v1617_v35  ;;  %v2577_v35 = vld [vmem:[%s4108_s3 + $0xbf8] sm:$0x1] }
 0xa0f   : > { %v1724_v57 = vpop.f32.mrf.mxu2 }
 0xa10   : > { %2518 = vmatpush.msk.msra.mxu0 %vm351_vm4, %v1724_v57  ;;  %v2596_v57 = vld [vmem:[%s4108_s3 + $0xc68] sm:$0xff] }
 0xa11   : > { %2519 = vmatmul.msk.f32.vlgmr.msra.gmra.mxu0 %vm347_vm5, %v2517_v56  ;;  %v2597_v56 = vld [vmem:[%s4108_s3 + $0xc70] sm:$0xff] }
 0xa12   : > { %2536 = vmatpush.msk.msrb.mxu0 %vm322_vm0, %v2535_v58  ;;  %v2595_v58 = vld [vmem:[%s4108_s3 + $0xc60] sm:$0xff] }
 0xa14   : > { %1777 = vmatpush.msrb.mxu0 %v2534_v59  ;;  %v2594_v59 = vld [vmem:[%s4108_s3 + $0xc58] sm:$0xff] }
 0xa16   : > { %1778 = vmatpush.msrb.mxu0 %v2533_v60  ;;  %v2593_v60 = vld [vmem:[%s4108_s3 + $0xc50] sm:$0xff] }
 0xa18   : > { %1779 = vmatpush.msrb.mxu0 %v2532_v61  ;;  %v2592_v61 = vld [vmem:[%s4108_s3 + $0xc48] sm:$0xff] }
 0xa1a   : > { %1780 = vmatpush.msrb.mxu0 %v2531_v62  ;;  %v2591_v62 = vld [vmem:[%s4108_s3 + $0xc40] sm:$0xff] }
 0xa1c   : > { %1781 = vmatpush.msrb.mxu0 %v2530_v63  ;;  %v2590_v63 = vld [vmem:[%s4108_s3 + $0xc38] sm:$0xff] }
 0xa1e   : > { %1782 = vmatpush.msrb.mxu0 %v2529_v0  ;;  %v2589_v0 = vld [vmem:[%s4108_s3 + $0xc30] sm:$0xff] }
 0xa20   : > { %1783 = vmatpush.msrb.mxu0 %v2528_v1  ;;  %v2588_v1 = vld [vmem:[%s4108_s3 + $0xc28] sm:$0xff] }
 0xa22   : > { %1784 = vmatpush.msrb.mxu0 %v2527_v2  ;;  %v2587_v2 = vld [vmem:[%s4108_s3 + $0xc20] sm:$0xff] }
 0xa24   : > { %1785 = vmatpush.msrb.mxu0 %v2526_v3  ;;  %v2586_v3 = vld [vmem:[%s4108_s3 + $0xc18] sm:$0xff] }
 0xa26   : > { %1786 = vmatpush.msrb.mxu0 %v2525_v4  ;;  %v2585_v4 = vld [vmem:[%s4108_s3 + $0xc10] sm:$0xff] }
 0xa28   : > { %1787 = vmatpush.msrb.mxu0 %v2524_v5  ;;  %v2584_v5 = vld [vmem:[%s4108_s3 + $0xc08] sm:$0xff] }
 0xa2a   : > { %1788 = vmatpush.msrb.mxu0 %v2523_v6  ;;  %v2583_v6 = vld [vmem:[%s4108_s3 + $0xc00] sm:$0xff] }
 0xa2c   : > { %1789 = vmatpush.msrb.mxu0 %v2522_v7 }
 0xa2e   : > { %1790 = vmatpush.msrb.mxu0 %v2521_v8 }
 0xa30   : > { %1791 = vmatpush.msrb.mxu0 %v2520_v9  ;;  %v2601_v9 = vld [vmem:[%s4109_s4 + $0x60] sm:$0xf] }
 0xa31   : > { %2537 = vmatmul.msk.f32.vlgmr.msrb.gmra.mxu0 %vm318_vm3, %v2941_v33 }
 0xa8e   : > { %v1752_v10 = vpop.f32.mrf.mxu0 }
 0xa8f   : > { %v1755_v11 = vadd.f32 %v1752_v10, %v1686_v55  ;;  %v2598_v55 = vld [vmem:[%s4108_s3 + $0xc78] sm:$0x1] }
 0xaae   : > { %v1793_v13 = vpop.f32.mrf.mxu0 }
 0xaaf   : > { %2539 = vmatpush.msk.msra.mxu1 %vm351_vm4, %v1793_v13 }
 0xab0   : > { %2540 = vmatmul.msk.f32.vlgmr.msra.gmra.mxu1 %vm347_vm5, %v2538_v12 }
 0xab1   : > { %2557 = vmatpush.msk.msrb.mxu1 %vm322_vm0, %v2556_v14 }
 0xab3   : > { %1846 = vmatpush.msrb.mxu1 %v2555_v15 }
 0xab5   : > { %1847 = vmatpush.msrb.mxu1 %v2554_v16 }
 0xab7   : > { %1848 = vmatpush.msrb.mxu1 %v2553_v17 }
 0xab9   : > { %1849 = vmatpush.msrb.mxu1 %v2552_v18 }
 0xabb   : > { %1850 = vmatpush.msrb.mxu1 %v2551_v19 }
 0xabd   : > { %1851 = vmatpush.msrb.mxu1 %v2550_v20 }
 0xabf   : > { %1852 = vmatpush.msrb.mxu1 %v2549_v21 }
 0xac1   : > { %1853 = vmatpush.msrb.mxu1 %v2548_v22 }
 0xac3   : > { %1854 = vmatpush.msrb.mxu1 %v2547_v23 }
 0xac5   : > { %1855 = vmatpush.msrb.mxu1 %v2546_v24 }
 0xac7   : > { %1856 = vmatpush.msrb.mxu1 %v2545_v25 }
 0xac9   : > { %1857 = vmatpush.msrb.mxu1 %v2544_v26 }
 0xacb   : > { %1858 = vmatpush.msrb.mxu1 %v2543_v27 }
 0xacd   : > { %1859 = vmatpush.msrb.mxu1 %v2542_v28 }
 0xacf   : > { %1860 = vmatpush.msrb.mxu1 %v2541_v29 }
 0xad0   : > { %2558 = vmatmul.msk.f32.vlgmr.msrb.gmra.mxu1 %vm318_vm3, %v2941_v33 }
 0xb2d   : > { %v1821_v30 = vpop.f32.mrf.mxu1 }
 0xb2e   : > { %v1824_v31 = vadd.f32 %v1821_v30, %v1755_v11 }
 0xb4d   : > { %v1862_v34 = vpop.f32.mrf.mxu1 }
 0xb4e   : > { %2560 = vmatpush.msk.msrb.mxu3 %vm351_vm4, %v1862_v34 }
 0xb4f   : > { %2561 = vmatmul.msk.f32.vlgmr.msrb.gmra.mxu3 %vm347_vm5, %v2559_v32 }
 0xb50   : > { %2578 = vmatpush.msk.msra.mxu3 %vm322_vm0, %v2577_v35 }
 0xb52   : > { %1915 = vmatpush.msra.mxu3 %v2576_v36 }
 0xb54   : > { %1916 = vmatpush.msra.mxu3 %v2575_v37 }
 0xb56   : > { %1917 = vmatpush.msra.mxu3 %v2574_v38 }
 0xb58   : > { %1918 = vmatpush.msra.mxu3 %v2573_v39 }
 0xb5a   : > { %1919 = vmatpush.msra.mxu3 %v2572_v40 }
 0xb5c   : > { %1920 = vmatpush.msra.mxu3 %v2571_v41 }
 0xb5e   : > { %1921 = vmatpush.msra.mxu3 %v2570_v42 }
 0xb60   : > { %1922 = vmatpush.msra.mxu3 %v2569_v43 }
 0xb62   : > { %1923 = vmatpush.msra.mxu3 %v2568_v44 }
 0xb64   : > { %1924 = vmatpush.msra.mxu3 %v2567_v45 }
 0xb66   : > { %1925 = vmatpush.msra.mxu3 %v2566_v46 }
 0xb68   : > { %1926 = vmatpush.msra.mxu3 %v2565_v47 }
 0xb6a   : > { %1927 = vmatpush.msra.mxu3 %v2564_v48 }
 0xb6c   : > { %1928 = vmatpush.msra.mxu3 %v2563_v49 }
 0xb6e   : > { %1929 = vmatpush.msra.mxu3 %v2562_v50 }
 0xb6f   : > { %2579 = vmatmul.msk.f32.vlgmr.msra.gmra.mxu3 %vm318_vm3, %v2941_v33 }
 0xbd2   : > { %v1890_v51 = vpop.f32.mrf.mxu3 }
 0xbd3   : > { %v1893_v52 = vadd.f32 %v1890_v51, %v1824_v31 }
 0xbf2   : > { %v1931_v54 = vpop.f32.mrf.mxu3 }
 0xbf3   : > { %2581 = vmatpush.msk.msrb.mxu2 %vm351_vm4, %v1931_v54 }
 0xbf4   : > { %2582 = vmatmul.msk.f32.vlgmr.msrb.gmra.mxu2 %vm347_vm5, %v2580_v53 }
 0xbf5   : > { %2599 = vmatpush.msk.msra.mxu2 %vm322_vm0, %v2598_v55 }
 0xbf7   : > { %1984 = vmatpush.msra.mxu2 %v2597_v56 }
 0xbf9   : > { %1985 = vmatpush.msra.mxu2 %v2596_v57 }
 0xbfb   : > { %1986 = vmatpush.msra.mxu2 %v2595_v58 }
 0xbfd   : > { %1987 = vmatpush.msra.mxu2 %v2594_v59 }
 0xbff   : > { %1988 = vmatpush.msra.mxu2 %v2593_v60 }
 0xc01   : > { %1989 = vmatpush.msra.mxu2 %v2592_v61 }
 0xc03   : > { %1990 = vmatpush.msra.mxu2 %v2591_v62 }
 0xc05   : > { %1991 = vmatpush.msra.mxu2 %v2590_v63 }
 0xc07   : > { %1992 = vmatpush.msra.mxu2 %v2589_v0 }
 0xc09   : > { %1993 = vmatpush.msra.mxu2 %v2588_v1 }
 0xc0b   : > { %1994 = vmatpush.msra.mxu2 %v2587_v2 }
 0xc0d   : > { %1995 = vmatpush.msra.mxu2 %v2586_v3 }
 0xc0f   : > { %1996 = vmatpush.msra.mxu2 %v2585_v4 }
 0xc11   : > { %1997 = vmatpush.msra.mxu2 %v2584_v5 }
 0xc13   : > { %1998 = vmatpush.msra.mxu2 %v2583_v6 }
 0xc14   : > { %2600 = vmatmul.msk.f32.vlgmr.msra.gmra.mxu2 %vm318_vm3, %v2941_v33 }
 0xc77   : > { %v1959_v7 = vpop.f32.mrf.mxu2 }
 0xc78   : > { %v1962_v8 = vadd.f32 %v1959_v7, %v1893_v52 }
 0xc97   : > { %v2000_v10 = vpop.f32.mrf.mxu2 }
 0xc98   : > { %2602 = vmatpush.msk.msra.mxu0 %vm351_vm4, %v2000_v10 }
 0xc99   : > { %2603 = vmatmul.msk.f32.vlgmr.msra.gmra.mxu0 %vm347_vm5, %v2601_v9 }
 0xd16   : > { %v2028_v11 = vpop.f32.mrf.mxu0 }
 0xd17   : > { %v2031_v12 = vadd.f32 %v2028_v11, %v1962_v8 }
 0xd19   : > { %2033 = vst.msk [vmem:[%s249_s30] sm:$0xf] %vm2032_vm6, %v2031_v12 }
 0xd1a PF: > { %s16_s21 = sadd.s32 1, %s2623_s21  }
 0xd1b   : > { %p13_p4 = scmp.ge.s32.totalorder %s16_s21, 4  }
 0xd1d   :  { %15 = sbr.rel (!%p13_p4) target bundleno = 1 (0x1), region = 122 }

</bundles_post_ra>
